<compile_context>
chip_gen: v7x
topology: tpu7x:2x2x1
jax: 0.10.0
libtpu: 0.0.40
codegen_flags: <defaults>
</compile_context>

<pallas_src>
import functools

import jax
import jax.numpy as jnp
from jax.experimental import pallas as pl
from jax.experimental.pallas import tpu as pltpu


# --------------------------------------------------------------------------- kernels

def _sos_single_step_kernel(x1_ref, x2_ref, w_ref, out_ref, *, compute_dtype):
    """One grid step per batch tile: full-G matmul + squared-sum reduce.

    No accumulator scratch / pl.when machinery -- used when the whole reduction
    axis fits in a single step (tile_k == G).
    """
    d = (x1_ref[...] - x2_ref[...]).astype(compute_dtype)
    e = jnp.dot(d, w_ref[...].astype(compute_dtype),
                preferred_element_type=jnp.float32)            # (tile_b, H) f32
    out_ref[...] = jnp.sum(e * e, axis=1).reshape(1, out_ref.shape[-1])


def _sos_multi_step_kernel(x1_ref, x2_ref, w_ref, out_ref, acc_ref, *,
                           tile_k, w_resident, compute_dtype):
    """Reduction over G is tiled (k axis last, 'arbitrary'); f32 VMEM accumulator."""
    k = pl.program_id(1)

    @pl.when(k == 0)
    def _init():
        acc_ref[...] = jnp.zeros_like(acc_ref)

    # Load, subtract, then feed the MXU (keep this ordering; see v5e note).
    d = (x1_ref[...] - x2_ref[...]).astype(compute_dtype)
    if w_resident:
        # W lives fully in VMEM (DMA'd once); slice the current K chunk in-kernel.
        start = pl.multiple_of(k * tile_k, tile_k)
        w = w_ref[pl.ds(start, tile_k), :]
    else:
        w = w_ref[...]
    acc_ref[...] += jnp.dot(d, w.astype(compute_dtype),
                            preferred_element_type=jnp.float32)

    @pl.when(k == pl.num_programs(1) - 1)
    def _finalize():
        a = acc_ref[...]                                        # (tile_b, H) f32
        out_ref[...] = jnp.sum(a * a, axis=1).reshape(1, out_ref.shape[-1])


# --------------------------------------------------------------------------- wrapper

def _vmem_budget_bytes():
    """Generation-aware usable-VMEM budget (leaves ~30% headroom)."""
    cap = 64 * 1024 * 1024            # conservative fallback: v7x per-TensorCore VMEM
    try:
        info = pltpu.get_tpu_info()
        cap = int(getattr(info, "vmem_capacity_bytes", cap))
    except Exception:
        pass
    return int(cap * 0.70)


def _pick_tile_b(B):
    # Prefer 256-high LHS tiles (v6e 2x256x256 MXU) but only if >= 2 batch tiles
    # remain, so the 'parallel' batch axis still shards across v7x's 2 TensorCores.
    if B % 256 == 0 and B >= 512:
        return 256
    if B % 128 == 0:
        return 128
    return B                           # full-extent block (small / odd batch sizes)


def _pick_tile_k(G, footprint_fn, budget):
    # Prefer a single reduction step when it fits in VMEM.
    if footprint_fn(G) <= budget:
        return G
    # Otherwise the largest 128-multiple divisor of G that fits.
    cand = (G // 128) * 128
    while cand >= 128:
        if G % cand == 0 and footprint_fn(cand) <= budget:
            return cand
        cand -= 128
    return None


def sum_of_squares(x1, x2, w, *, compute_dtype=jnp.bfloat16,
                   tile_b=None, tile_k=None, w_resident=None):
    """Pallas equivalent of SumOfSquares.forward with a linear encode_gex.

    Computes sum_h (((x1 - x2) @ W)_h)^2 per row.  The encoder bias cancels in the
    difference, so it is not an input to the kernel.  compute_dtype=bf16 (default)
    casts the streams at the wrapper boundary (halves HBM bytes, native MXU path);
    pass compute_dtype=jnp.float32 for tight-tolerance results.
    """
    B, G = x1.shape
    G2, H = w.shape
    assert G2 == G and x2.shape == (B, G)

    # Cast at the wrapper boundary (halves HBM traffic for the dominant x stream
    # when compute_dtype is bf16; identity for f32 inputs + f32 compute).
    x1 = x1.astype(compute_dtype)
    x2 = x2.astype(compute_dtype)
    w = w.astype(compute_dtype)
    itemsize = jnp.dtype(compute_dtype).itemsize

    budget = _vmem_budget_bytes()

    if tile_b is None:
        tile_b = _pick_tile_b(B)
    tile_b = min(tile_b, B)
    assert B % tile_b == 0, (B, tile_b)
    assert tile_b == B or tile_b % 128 == 0, tile_b

    # W residency: counted double-buffered to be safe wrt pipeline allocation.
    w_bytes_resident = 2 * G * H * itemsize
    if w_resident is None:
        w_resident = w_bytes_resident <= budget // 2

    def footprint(tk):
        fb = 2 * 2 * tile_b * tk * itemsize                    # x1, x2 (double-buffered)
        fb += w_bytes_resident if w_resident else 2 * tk * H * itemsize
        fb += tile_b * H * 4                                   # f32 accumulator / e tile
        fb += 2 * tile_b * 4                                   # lane-dense output row
        return fb

    if tile_k is None:
        tile_k = _pick_tile_k(G, footprint, budget)
        assert tile_k is not None, "no tile_k fits the VMEM budget; shrink tile_b"
    tile_k = min(tile_k, G)
    assert G % tile_k == 0, (G, tile_k)
    assert tile_k == G or tile_k % 128 == 0, tile_k

    vmem_bytes = footprint(tile_k)
    assert vmem_bytes <= budget, (vmem_bytes, budget)
    vmem_limit = int(budget)                                   # generation-aware scope

    grid_b = B // tile_b
    grid_k = G // tile_k
    out_shape = jax.ShapeDtypeStruct((1, B), jnp.float32)

    if grid_k == 1:
        # Single reduction step: no accumulator scratch, no init/finalize.
        kernel = functools.partial(_sos_single_step_kernel,
                                   compute_dtype=compute_dtype)
        out = pl.pallas_call(
            kernel,
            out_shape=out_shape,
            grid_spec=pltpu.PrefetchScalarGridSpec(
                num_scalar_prefetch=0,
                grid=(grid_b,),
                in_specs=[
                    pl.BlockSpec((tile_b, G), lambda i: (i, 0)),      # x1 tile
                    pl.BlockSpec((tile_b, G), lambda i: (i, 0)),      # x2 tile
                    pl.BlockSpec((G, H), lambda i: (0, 0)),           # W resident (DMA once)
                ],
                out_specs=pl.BlockSpec((1, tile_b), lambda i: (0, i)),  # lane-dense row
            ),
            compiler_params=pltpu.CompilerParams(
                dimension_semantics=("parallel",),
                vmem_limit_bytes=vmem_limit),
        )(x1, x2, w)
    else:
        kernel = functools.partial(_sos_multi_step_kernel,
                                   tile_k=tile_k, w_resident=w_resident,
                                   compute_dtype=compute_dtype)
        if w_resident:
            w_spec = pl.BlockSpec((G, H), lambda i, k: (0, 0))        # resident, slice in-kernel
        else:
            w_spec = pl.BlockSpec((tile_k, H), lambda i, k: (k, 0))   # streamed per k
        out = pl.pallas_call(
            kernel,
            out_shape=out_shape,
            grid_spec=pltpu.PrefetchScalarGridSpec(
                num_scalar_prefetch=0,
                grid=(grid_b, grid_k),
                in_specs=[
                    pl.BlockSpec((tile_b, tile_k), lambda i, k: (i, k)),   # x1 tile
                    pl.BlockSpec((tile_b, tile_k), lambda i, k: (i, k)),   # x2 tile
                    w_spec,
                ],
                out_specs=pl.BlockSpec((1, tile_b), lambda i, k: (0, i)),  # lane-dense row
                scratch_shapes=[pltpu.VMEM((tile_b, H), jnp.float32)],
            ),
            compiler_params=pltpu.CompilerParams(
                dimension_semantics=("parallel", "arbitrary"),
                vmem_limit_bytes=vmem_limit),
        )(x1, x2, w)

    return out.reshape(B)


def reference(x1, x2, w, b):
    e1 = x1.astype(jnp.float32) @ w.astype(jnp.float32) + b
    e2 = x2.astype(jnp.float32) @ w.astype(jnp.float32) + b
    return jnp.sum((e1 - e2) ** 2, axis=1)


if __name__ == "__main__":
    # Small shapes: batch=256, genes=1024, hidden=256.
    B, G, H = 256, 1024, 256

    key = jax.random.PRNGKey(0)
    k1, k2, kw, kb = jax.random.split(key, 4)

    x1 = jax.random.normal(k1, (B, G), dtype=jnp.float32)
    x2 = jax.random.normal(k2, (B, G), dtype=jnp.float32)

    # Deterministic synthetic encoder parameters (encode_gex ~ Linear(G, H)).
    # TODO(synk): the wrapped model is opaque in the original module; a linear
    # projection stands in for model.encode_gex.  If encode_gex is nonlinear,
    # the bias-cancellation / single-matmul simplification no longer applies.
    w = jax.random.normal(kw, (G, H), dtype=jnp.float32) * (1.0 / jnp.sqrt(G))
    b = jax.random.normal(kb, (H,), dtype=jnp.float32) * 0.01

    ref = reference(x1, x2, w, b)                 # reference keeps the bias

    # 1) Default path: bf16 compute/streams, auto tiles (single-k, resident W).
    out_bf16 = jax.block_until_ready(sum_of_squares(x1, x2, w))
    assert out_bf16.shape == (B,)
    assert jnp.allclose(out_bf16, ref, rtol=3e-2, atol=5e-1), (
        float(jnp.max(jnp.abs(out_bf16 - ref))))

    # 2) f32 path with a tiled reduction (multi-k accumulator, resident W) -- tight tol.
    out_f32 = jax.block_until_ready(
        sum_of_squares(x1, x2, w, compute_dtype=jnp.float32, tile_k=256))
    assert jnp.allclose(out_f32, ref, rtol=2e-4, atol=1e-3), (
        float(jnp.max(jnp.abs(out_f32 - ref))))

    # 3) f32 path with streamed-W fallback (exercises the non-resident branch).
    out_stream = jax.block_until_ready(
        sum_of_squares(x1, x2, w, compute_dtype=jnp.float32, tile_k=256,
                       w_resident=False))
    assert jnp.allclose(out_stream, ref, rtol=2e-4, atol=1e-3), (
        float(jnp.max(jnp.abs(out_stream - ref))))

    print("KERNEL_OK")
</pallas_src>

<mosaic_0001>
module attributes {stable_mosaic.version = 11 : i64} {
  func.func @_sos_single_step_kernel(%arg0: i32, %arg1: memref<128x1024xbf16, #tpu.memory_space<vmem>>, %arg2: memref<128x1024xbf16, #tpu.memory_space<vmem>>, %arg3: memref<1024x256xbf16, #tpu.memory_space<vmem>>, %arg4: memref<1x128xf32, #tpu.memory_space<vmem>>) attributes {dimension_semantics = [#tpu.dimension_semantics<parallel>], iteration_bounds = array<i64: 2>, scalar_prefetch = 0 : i64, scratch_operands = 0 : i64, tpu.core_type = #tpu.core_type<tc>, window_params = [{transform_indices = @transform_0, window_bounds = array<i64: 128, 1024>}, {transform_indices = @transform_1, window_bounds = array<i64: 128, 1024>}, {pipeline_mode = #tpu.pipeline_mode<synchronous>, transform_indices = @transform_2, window_bounds = array<i64: 1024, 256>}, {transform_indices = @transform_3, window_bounds = array<i64: 1, 128>}]} {
    %c0 = arith.constant 0 : index
    %c0_0 = arith.constant 0 : index
    %0 = vector.load %arg1[%c0, %c0_0] : memref<128x1024xbf16, #tpu.memory_space<vmem>>, vector<128x1024xbf16>
    %c0_1 = arith.constant 0 : index
    %c0_2 = arith.constant 0 : index
    %1 = vector.load %arg2[%c0_1, %c0_2] : memref<128x1024xbf16, #tpu.memory_space<vmem>>, vector<128x1024xbf16>
    %2 = arith.subf %0, %1 : vector<128x1024xbf16>
    %c0_3 = arith.constant 0 : index
    %c0_4 = arith.constant 0 : index
    %3 = vector.load %arg3[%c0_3, %c0_4] : memref<1024x256xbf16, #tpu.memory_space<vmem>>, vector<1024x256xbf16>
    %cst = arith.constant dense<0.000000e+00> : vector<128x256xf32>
    %4 = tpu.matmul %2, %3, %cst {dimension_numbers = #tpu.dot_dimension_numbers<[1], [0], [0], [1], [0, 0, 1, 1], [], []>} : vector<128x1024xbf16>, vector<1024x256xbf16>, vector<128x256xf32> -> vector<128x256xf32>
    %5 = arith.mulf %4, %4 : vector<128x256xf32>
    %cst_5 = arith.constant dense<0.000000e+00> : vector<128xf32>
    %6 = vector.multi_reduction <add>, %5, %cst_5 [1] : vector<128x256xf32> to vector<128xf32>
    %7 = vector.shape_cast %6 : vector<128xf32> to vector<1x128xf32>
    %c0_6 = arith.constant 0 : index
    %c0_7 = arith.constant 0 : index
    %8 = vector.load %arg4[%c0_6, %c0_7] : memref<1x128xf32, #tpu.memory_space<vmem>>, vector<1x128xf32>
    tpu.vector_store %arg4[%c0_6, %c0_7], %7 {strides = array<i32>} : memref<1x128xf32, #tpu.memory_space<vmem>>, vector<1x128xf32>,
    return
  }
  func.func @transform_0(%arg0: i32) -> (i32, i32) {
    %c0_i32 = arith.constant 0 : i32
    %c0_i32_0 = arith.constant 0 : i32
    return %arg0, %c0_i32 : i32, i32
  }
  func.func @transform_1(%arg0: i32) -> (i32, i32) {
    %c0_i32 = arith.constant 0 : i32
    %c0_i32_0 = arith.constant 0 : i32
    return %arg0, %c0_i32 : i32, i32
  }
  func.func @transform_2(%arg0: i32) -> (i32, i32) {
    %c0_i32 = arith.constant 0 : i32
    %c0_i32_0 = arith.constant 0 : i32
    %c0_i32_1 = arith.constant 0 : i32
    return %c0_i32, %c0_i32_0 : i32, i32
  }
  func.func @transform_3(%arg0: i32) -> (i32, i32) {
    %c0_i32 = arith.constant 0 : i32
    %c0_i32_0 = arith.constant 0 : i32
    return %c0_i32, %arg0 : i32, i32
  }
}

</mosaic_0001>

<bundles_post_ra>
// kernel: tpu_custom_call.1
= control target key start
LH: loop header
LB: loop body
LE: loop exit
PB: predicated region body
PF: predicated region fallthrough
CT: control target
= control target key end

     0   :  { %8 = vsyncpa [#allocation3], 0  ;;  %s3496_s0 = inlined_call_operand.hbm [shape: bf16[256,1024], index: 0, kind: input, shape index: {}]   ;;  %s3497_s1 = inlined_call_operand.hbm [shape: bf16[256,1024], index: 1, kind: input, shape index: {}]   ;;  %s3498_s2 = inlined_call_operand.hbm [shape: bf16[1024,256], index: 2, kind: input, shape index: {}]   ;;  %s3499_s3 = inlined_call_operand.hbm [shape: f32[1,256], index: 3, kind: output, shape index: {}]  }
   0x1   :  { %10 = vsyncpa [#allocation3 + $0x1], 0 }
   0x2   :  { %11 = vsyncpa [#allocation6], 0 }
   0x3   :  { %13 = vsyncpa [#allocation6 + $0x1], 0 }
   0x4   :  { %14 = vsyncpa [#allocation4], 0 }
   0x5   :  { %16 = vsyncpa [#allocation4 + $0x1], 0  ;;  %s3059_s12 = smov 0   ;;  %s3061_s13 = smov 0  }
   0x6   :  { %s3063_s14 = smov 0   ;;  %s3065_s15 = smov 0  }
   0x7 LB: > { %s3080_s16 = sadd.s32 4294967295, %s3029_s15   ;;  %s2298_s17 = sadd.s32 4294967294, %s3029_s15   ;;  %s3029_s15 = sphi %s3065_s15, %s3519_s15   ;;  %s3025_s14 = sphi %s3063_s14, %s3518_s14   ;;  %s3021_s13 = sphi %s3061_s13, %s3517_s13   ;;  %s3017_s12 = sphi %s3059_s12, %s3516_s12  }
   0x8   : > { %p42_p0 = scmp.ne.s32.totalorder %s3021_s13, %s3017_s12  ;;  %p3500_p1 = scmp.eq.s32.totalorder %s3080_s16, 0 }
   0x9   : > { %p119_p3 = scmp.eq.s32.totalorder %s2298_s17, 1  ;;  %p2299_p5 = scmp.ge.s32.totalorder %s3029_s15, 1 }
   0xa   : > { %p3089_p4 = por %p3500_p1, %p42_p0  ;;  %p126_p7 = scmp.lt.s32.totalorder %s3029_s15, 3 }
   0xb   : > { %p3094_p6 = por %p119_p3, %p42_p0  ;;  %s3031_s21 = smov [#allocation7]  }
   0xc   : > { %s3503_s18 = scalar_select %p3089_p4, 1, 0 }
   0xd   : > { %s3504_s19 = scalar_select %p3094_p6, 1, 0 }
   0xe   : > { %p3099_p8 = pnand %p2299_p5, %p126_p7  ;;  %s138_s22 = sshll.u32 %s3031_s21, 4  ;;  %s3103_s22 = int_to_ptr.vmem [resolvable:$true] %s138_s22 }
   0xf   : > { %s3115_s24 = sadd.s32 1, %s3029_s15   ;;  %s29_s25 = sadd.s32 1, %s3025_s14 }
  0x10   : > { %s3505_s20 = scalar_select %p3099_p8, 1, 0 }
  0x11   : > { %p2619_p9 = pneg %p3099_p8  ;;  %s26_s26 = ssub.s32 %s3029_s15, %s3115_s24 }
  0x12   : > { %s2867_s29 = scalar_lea.hbm %s3498_s2, 16384 }
  0x13   : > { %p3110_p11 = pnand %p2619_p9, %p3500_p1  ;;  %p2868_p12 = scmp.ne.s32.totalorder %s3498_s2, %s2867_s29 }
  0x14   : > { %p2874_p5 = scmp.lt.u32.totalorder %s2867_s29, %s3498_s2 }
  0x15   : > { %p2869_p13 = pneg %p3110_p11 }
  0x17   : > { %p2870_p0 = pnand %p2869_p13, %p2868_p12 }
  0x19   : > { %p2871_p3 = pneg %p2870_p0 }
  0x1b   : > { %p2876_p7 = pnand %p2874_p5, %p2871_p3 }
  0x1d   : > { %2879 = shalt.err (!%p2876_p7)
}
  0x1e   : > { %s2880_s7 = scalar_lea.vmem %s3103_s22, 16384  ;;  %p2888_p2 = scmp.lt.s32.totalorder %s3103_s22, %s3103_s22 }
  0x1f   : > { %p2881_p9 = scmp.ne.s32.totalorder %s3103_s22, %s2880_s7  ;;  %p2889_p6 = scmp.lt.s32.totalorder %s2880_s7, %s2880_s7 }
  0x21   : > { %p2883_p10 = pnand %p2881_p9, %p2869_p13  ;;  %p2890_p4 = por %p2889_p6, %p2888_p2 }
  0x23   : > { %p2884_p1 = pneg %p2883_p10 }
  0x25   : > { %p2891_p8 = pnand %p2890_p4, %p2884_p1 }
  0x27   : > { %2894 = shalt.err (!%p2891_p8)
}
  0x28   : > { %s3032_s8 = smov 128   ;;  %s3033_s9 = smov 8  }
  0x29   : > { %2622 = dma.hbm_to_vmem [thread:$0]  (!%p3110_p11), %s3498_s2, 16384, %s3103_s22, [#allocation6], %s3032_s8, %s3032_s8, %s3033_s9  }
  0x2a   : > { %p27_p1 = scmp.eq.s32.totalorder %s26_s26, 0  ;;  %p36_p2 = scmp.ne.s32.totalorder %s3025_s14, %s3021_s13 }
  0x2b   : > { %p37_p4 = scmp.eq.s32.totalorder %s3029_s15, 0  ;;  %p2635_p6 = scmp.lt.s32.totalorder %s3029_s15, 2 }
  0x2c   : > { %s3146_s17 = scalar_select %p27_p1, %s3025_s14, %s29_s25  }
  0x2d   : > { %p38_p8 = por %p37_p4, %p36_p2  ;;  %p3507_p10 = scmp.eq.s32.totalorder %s3080_s16, 1 }
  0x2e   : > { %s152_s27 = sand.u32 1, %s3025_s14   ;;  %s2510_s28 = sshll.u32 %s3029_s15, 13 }
  0x2f   : > { %p3150_p12 = por %p3507_p10, %p36_p2  ;;  %s3156_s29 = sshll.u32 %s152_s27, 9 }
  0x30   : > { %s3163_s22 = scalar_lea.hbm %s3496_s0, %s2510_s28  ;;  %s156_s25 = scalar_lea.vmem [#allocation2], %s3156_s29 }
  0x31   : > { %s164_s26 = sshll.u32 %s156_s25, 4  ;;  %p3166_p11 = pnand %p2635_p6, %p38_p8  ;;  %s3170_s26 = int_to_ptr.vmem [resolvable:$true] %s164_s26 }
  0x32   : > { %s3172_s5 = scalar_lea.sflag [#allocation3], %s152_s27  ;;  %s2895_s6 = scalar_lea.hbm %s3163_s22, 8192 }
  0x33   : > { %p2896_p13 = scmp.ne.s32.totalorder %s3163_s22, %s2895_s6  ;;  %p2897_p0 = pneg %p3166_p11 }
  0x34   : > { %s2900_s9 = scalar_lea.hbm %s3496_s0, 16384  ;;  %p2901_p7 = scmp.lt.u32.totalorder %s3163_s22, %s3496_s0 }
  0x35   : > { %p2898_p3 = pnand %p2897_p0, %p2896_p13  ;;  %p2902_p9 = scmp.lt.u32.totalorder %s2900_s9, %s2895_s6 }
  0x36   : > { %p2904_p2 = scmp.lt.u32.totalorder %s2895_s6, %s3163_s22 }
  0x37   : > { %p2899_p5 = pneg %p2898_p3  ;;  %p2903_p1 = por %p2902_p9, %p2901_p7 }
  0x39   : > { %p2905_p4 = por %p2904_p2, %p2903_p1 }
  0x3b   : > { %p2906_p6 = pnand %p2905_p4, %p2899_p5 }
  0x3d   : > { %2909 = shalt.err (!%p2906_p6)
}
  0x3e   : > { %s2910_s27 = scalar_lea.vmem %s3170_s26, 8192  ;;  %s3034_s23 = smov [#allocation2]  }
  0x3f   : > { %p2911_p8 = scmp.ne.s32.totalorder %s3170_s26, %s2910_s27  ;;  %s2915_s30 = sshll.u32 %s3034_s23, 4  ;;  %s2916_s30 = int_to_ptr.vmem [resolvable:$false] %s2915_s30 }
  0x40   : > { %s2917_s25 = scalar_lea.vmem %s2916_s30, 16384  ;;  %p2918_p3 = scmp.lt.s32.totalorder %s3170_s26, %s2916_s30 }
  0x41   : > { %p2913_p10 = pnand %p2911_p8, %p2897_p0  ;;  %p2919_p7 = scmp.lt.s32.totalorder %s2917_s25, %s2910_s27 }
  0x43   : > { %p2914_p13 = pneg %p2913_p10  ;;  %p2920_p9 = por %p2919_p7, %p2918_p3 }
  0x45   : > { %p2921_p1 = pnand %p2920_p9, %p2914_p13 }
  0x47   : > { %2924 = shalt.err (!%p2921_p1)
}
  0x48   : > { %s3035_s6 = smov 512   ;;  %s3036_s7 = smov 32  }
  0x49   : > { %2626 = dma.hbm_to_vmem [thread:$0]  (!%p3166_p11), %s3163_s22, 8192, %s3170_s26, %s3172_s5, %s3035_s6, %s3035_s6, %s3036_s7  }
  0x4a   : > { %s3208_s10 = scalar_lea.hbm %s3497_s1, %s2510_s28  ;;  %s178_s11 = scalar_lea.vmem [#allocation5], %s3156_s29 }
  0x4b   : > { %s186_s27 = sshll.u32 %s178_s11, 4  ;;  %s174_s23 = sand.u32 1, %s3029_s15   ;;  %s3212_s27 = int_to_ptr.vmem [resolvable:$true] %s186_s27 }
  0x4c   : > { %s3214_s30 = scalar_lea.sflag [#allocation6], %s174_s23  ;;  %s2925_s25 = scalar_lea.hbm %s3208_s10, 8192 }
  0x4d   : > { %p2926_p5 = scmp.ne.s32.totalorder %s3208_s10, %s2925_s25  ;;  %s2930_s26 = scalar_lea.hbm %s3497_s1, 16384 }
  0x4e   : > { %p2931_p6 = scmp.lt.u32.totalorder %s3208_s10, %s3497_s1  ;;  %p2932_p8 = scmp.lt.u32.totalorder %s2930_s26, %s2925_s25 }
  0x4f   : > { %p2928_p2 = pnand %p2926_p5, %p2897_p0  ;;  %p2934_p13 = scmp.lt.u32.totalorder %s2925_s25, %s3208_s10 }
  0x50   : > { %p2933_p10 = por %p2932_p8, %p2931_p6 }
  0x51   : > { %p2929_p4 = pneg %p2928_p2 }
  0x52   : > { %p2935_p3 = por %p2934_p13, %p2933_p10 }
  0x54   : > { %p2936_p7 = pnand %p2935_p3, %p2929_p4 }
  0x56   : > { %2939 = shalt.err (!%p2936_p7)
}
  0x57   : > { %s2940_s29 = scalar_lea.vmem %s3212_s27, 8192  ;;  %s3037_s9 = smov [#allocation5]  }
  0x58   : > { %p2941_p9 = scmp.ne.s32.totalorder %s3212_s27, %s2940_s29  ;;  %s2945_s11 = sshll.u32 %s3037_s9, 4  ;;  %s2946_s11 = int_to_ptr.vmem [resolvable:$false] %s2945_s11 }
  0x59   : > { %s2947_s23 = scalar_lea.vmem %s2946_s11, 16384  ;;  %p2948_p2 = scmp.lt.s32.totalorder %s3212_s27, %s2946_s11 }
  0x5a   : > { %p2943_p1 = pnand %p2941_p9, %p2897_p0  ;;  %p2949_p6 = scmp.lt.s32.totalorder %s2947_s23, %s2940_s29 }
  0x5c   : > { %p2944_p5 = pneg %p2943_p1  ;;  %p2950_p8 = por %p2949_p6, %p2948_p2 }
  0x5e   : > { %p2951_p10 = pnand %p2950_p8, %p2944_p5 }
  0x60   : > { %2954 = shalt.err (!%p2951_p10)
}
  0x61   : > { %2629 = dma.hbm_to_vmem [thread:$0]  (!%p3166_p11), %s3208_s10, 8192, %s3212_s27, %s3214_s30, %s3035_s6, %s3035_s6, %s3036_s7  }
  0x62   : > { %p3510_p0 = scmp.ne.s32.totalorder %s3505_s20, 0 }
  0x63   : > { %s3246_s25 = sand.u32 (!%p3510_p0), 1, %s3021_s13   ;;  %p3511_p4 = scmp.ne.s32.totalorder (!%p3510_p0), %s3503_s18, 0 }
  0x64   : > { %198 = sbr.rel (%p3510_p0) target bundleno = 680 (0x2a8), region = 32  ;;  %s2311_s22 = sshll.u32 (!%p3510_p0), %s3246_s25, 9 }
  0x65   : > { %s201_s28 = scalar_lea.sflag (!%p3510_p0), [#allocation3], %s3246_s25  ;;  %s3250_s26 = scalar_lea.vmem (!%p3510_p0), [#allocation2], %s2311_s22 }
  0x6b   : > { %3000 = dma.done.wait (%p3511_p4), %s201_s28, 8192  }
  0x6c   : > { %3002 = vsyncadd (%p3511_p4), %s201_s28, 4294959104  ;;  %s209_s4 = sand.u32 1, %s3080_s16   ;;  %s3257_s6 = scalar_lea.vmem [#allocation5], %s2311_s22 }
  0x6d   : > { %s210_s20 = scalar_lea.sflag [#allocation6], %s209_s4 }
  0x6e   : > { %3004 = dma.done.wait (%p3511_p4), %s210_s20, 8192  }
  0x6f   : > { %3006 = vsyncadd (%p3511_p4), %s210_s20, 4294959104  ;;  %p3512_p11 = scmp.eq.s32.totalorder %s3080_s16, 0 }
  0x71   : > { %3008 = dma.done.wait (%p3512_p11), [#allocation6], 16384   ;;  %p3513_p13 = pmov %p3512_p11 }
  0x72   : > { %v2675_v0 = vld [vmem:[#allocation7 + $0x4] ss:$8 sps:$4 sm:$0xff]   ;;  %v2679_v2 = vld [vmem:[#allocation7] ss:$8 sps:$4 sm:$0xff]   ;;  %v2681_v4 = vld [vmem:[#allocation7 + $0x14] ss:$8 sps:$4 sm:$0xff]  }
  0x73   : > { %3010 = vsyncadd (%p3513_p13), [#allocation6], 4294950912  ;;  %v2677_v1 = vld [vmem:[#allocation7 + $0x204] ss:$8 sps:$4 sm:$0xff]   ;;  %1526 = vmatprep.subr.bf16.mxu1 %v2675_v0  ;;  %v2680_v3 = vld [vmem:[#allocation7 + $0x200] ss:$8 sps:$4 sm:$0xff]  }
  0x74   : > { %1752 = vmatprep.subr.bf16.mxu0 %v2677_v1  ;;  %1527 = vmatpush1.bf16.msra.mxu1 %v2679_v2  ;;  %v2683_v5 = vld [vmem:[#allocation7 + $0x214] ss:$8 sps:$4 sm:$0xff]   ;;  %v2685_v6 = vld [vmem:[#allocation7 + $0x10] ss:$8 sps:$4 sm:$0xff]   ;;  %v2687_v8 = vld [vmem:[#allocation7 + $0x24] ss:$8 sps:$4 sm:$0xff]  }
  0x75   : > { %1753 = vmatpush1.bf16.msra.mxu0 %v2680_v3  ;;  %1528 = vmatprep.subr.bf16.mxu1 %v2681_v4  ;;  %v2686_v7 = vld [vmem:[#allocation7 + $0x210] ss:$8 sps:$4 sm:$0xff]   ;;  %v2689_v9 = vld [vmem:[#allocation7 + $0x224] ss:$8 sps:$4 sm:$0xff]   ;;  %v2691_v10 = vld [vmem:[#allocation7 + $0x20] ss:$8 sps:$4 sm:$0xff]  }
  0x76   : > { %1754 = vmatprep.subr.bf16.mxu0 %v2683_v5  ;;  %v2692_v11 = vld [vmem:[#allocation7 + $0x220] ss:$8 sps:$4 sm:$0xff]   ;;  %v2693_v12 = vld [vmem:[#allocation7 + $0x34] ss:$8 sps:$4 sm:$0xff]   ;;  %v2697_v14 = vld [vmem:[#allocation7 + $0x30] ss:$8 sps:$4 sm:$0xff]  }
  0x77   : > { %v2695_v13 = vld [vmem:[#allocation7 + $0x234] ss:$8 sps:$4 sm:$0xff]   ;;  %v2698_v15 = vld [vmem:[#allocation7 + $0x230] ss:$8 sps:$4 sm:$0xff]   ;;  %v2699_v16 = vld [vmem:[#allocation7 + $0x44] ss:$8 sps:$4 sm:$0xff]  }
  0x78   : > { %1529 = vmatpush1.bf16.msra.mxu1 %v2685_v6  ;;  %v2701_v17 = vld [vmem:[#allocation7 + $0x244] ss:$8 sps:$4 sm:$0xff]   ;;  %v2703_v18 = vld [vmem:[#allocation7 + $0x40] ss:$8 sps:$4 sm:$0xff]   ;;  %v2705_v20 = vld [vmem:[#allocation7 + $0x54] ss:$8 sps:$4 sm:$0xff]  }
  0x79   : > { %1755 = vmatpush1.bf16.msra.mxu0 %v2686_v7  ;;  %1530 = vmatprep.subr.bf16.mxu1 %v2687_v8  ;;  %v2704_v19 = vld [vmem:[#allocation7 + $0x240] ss:$8 sps:$4 sm:$0xff]   ;;  %v2707_v21 = vld [vmem:[#allocation7 + $0x254] ss:$8 sps:$4 sm:$0xff]   ;;  %v2709_v22 = vld [vmem:[#allocation7 + $0x50] ss:$8 sps:$4 sm:$0xff]  }
  0x7a   : > { %1756 = vmatprep.subr.bf16.mxu0 %v2689_v9  ;;  %v2710_v23 = vld [vmem:[#allocation7 + $0x250] ss:$8 sps:$4 sm:$0xff]   ;;  %v2711_v24 = vld [vmem:[#allocation7 + $0x64] ss:$8 sps:$4 sm:$0xff]   ;;  %v2715_v26 = vld [vmem:[#allocation7 + $0x60] ss:$8 sps:$4 sm:$0xff]  }
  0x7b   : > { %v2713_v25 = vld [vmem:[#allocation7 + $0x264] ss:$8 sps:$4 sm:$0xff]   ;;  %v2716_v27 = vld [vmem:[#allocation7 + $0x260] ss:$8 sps:$4 sm:$0xff]   ;;  %v2717_v28 = vld [vmem:[#allocation7 + $0x74] ss:$8 sps:$4 sm:$0xff]  }
  0x7c   : > { %1531 = vmatpush1.bf16.msra.mxu1 %v2691_v10  ;;  %v2719_v29 = vld [vmem:[#allocation7 + $0x274] ss:$8 sps:$4 sm:$0xff]   ;;  %v2721_v30 = vld [vmem:[#allocation7 + $0x70] ss:$8 sps:$4 sm:$0xff]   ;;  %v2723_v32 = vld [vmem:[#allocation7 + $0x84] ss:$8 sps:$4 sm:$0xff]  }
  0x7d   : > { %1757 = vmatpush1.bf16.msra.mxu0 %v2692_v11  ;;  %1532 = vmatprep.subr.bf16.mxu1 %v2693_v12  ;;  %v2722_v31 = vld [vmem:[#allocation7 + $0x270] ss:$8 sps:$4 sm:$0xff]   ;;  %v2725_v33 = vld [vmem:[#allocation7 + $0x284] ss:$8 sps:$4 sm:$0xff]   ;;  %v2727_v34 = vld [vmem:[#allocation7 + $0x80] ss:$8 sps:$4 sm:$0xff]  }
  0x7e   : > { %1758 = vmatprep.subr.bf16.mxu0 %v2695_v13  ;;  %v2728_v35 = vld [vmem:[#allocation7 + $0x280] ss:$8 sps:$4 sm:$0xff]   ;;  %v2729_v36 = vld [vmem:[#allocation7 + $0x94] ss:$8 sps:$4 sm:$0xff]   ;;  %v2733_v38 = vld [vmem:[#allocation7 + $0x90] ss:$8 sps:$4 sm:$0xff]  }
  0x7f   : > { %v2731_v37 = vld [vmem:[#allocation7 + $0x294] ss:$8 sps:$4 sm:$0xff]   ;;  %v2734_v39 = vld [vmem:[#allocation7 + $0x290] ss:$8 sps:$4 sm:$0xff]   ;;  %v2735_v40 = vld [vmem:[#allocation7 + $0xa4] ss:$8 sps:$4 sm:$0xff]  }
  0x80   : > { %1533 = vmatpush1.bf16.msra.mxu1 %v2697_v14  ;;  %v2737_v41 = vld [vmem:[#allocation7 + $0x2a4] ss:$8 sps:$4 sm:$0xff]   ;;  %v2739_v42 = vld [vmem:[#allocation7 + $0xa0] ss:$8 sps:$4 sm:$0xff]   ;;  %v2741_v44 = vld [vmem:[#allocation7 + $0xb4] ss:$8 sps:$4 sm:$0xff]  }
  0x81   : > { %1759 = vmatpush1.bf16.msra.mxu0 %v2698_v15  ;;  %1534 = vmatprep.subr.bf16.mxu1 %v2699_v16  ;;  %v2740_v43 = vld [vmem:[#allocation7 + $0x2a0] ss:$8 sps:$4 sm:$0xff]   ;;  %v2743_v45 = vld [vmem:[#allocation7 + $0x2b4] ss:$8 sps:$4 sm:$0xff]   ;;  %v2745_v46 = vld [vmem:[#allocation7 + $0xb0] ss:$8 sps:$4 sm:$0xff]  }
  0x82   : > { %1760 = vmatprep.subr.bf16.mxu0 %v2701_v17  ;;  %v2746_v47 = vld [vmem:[#allocation7 + $0x2b0] ss:$8 sps:$4 sm:$0xff]   ;;  %v246_v48 = vld [vmem:[%s3250_s26] sm:$0xff]  ;;  %v2753_v1 = vld [vmem:[#allocation7 + $0xd4] ss:$8 sps:$4 sm:$0xff]   ;;  %vm2085_vm0 = vcmask 130112  }
  0x83   : > { %v2747_v49 = vld [vmem:[#allocation7 + $0xc4] ss:$8 sps:$4 sm:$0xff]   ;;  %v248_v56 = vld [vmem:[%s3250_s26 + $0x10] sm:$0xff]  ;;  %v2751_v63 = vld [vmem:[#allocation7 + $0xc0] ss:$8 sps:$4 sm:$0xff]   ;;  %vm2092_vm1 = vcmask 195712  }
  0x84   : > { %1535 = vmatpush1.bf16.msra.mxu1 %v2703_v18  ;;  %v2749_v50 = vld [vmem:[#allocation7 + $0x2c4] ss:$8 sps:$4 sm:$0xff]   ;;  %v252_v57 = vld [vmem:[%s3250_s26 + $0x30] sm:$0xff]  ;;  %v2752_v0 = vld [vmem:[#allocation7 + $0x2c0] ss:$8 sps:$4 sm:$0xff]   ;;  %vm2099_vm2 = vcmask 261312  }
  0x85   : > { %1761 = vmatpush1.bf16.msra.mxu0 %v2704_v19  ;;  %1536 = vmatprep.subr.bf16.mxu1 %v2705_v20  ;;  %v250_v51 = vld [vmem:[%s3250_s26 + $0x20] sm:$0xff]  ;;  %v312_v58 = vld [vmem:[%s3257_s6 + $0x10] sm:$0xff]  ;;  %vm2106_vm3 = vcmask 326912   ;;  %vm2113_vm4 = vcmask 392512   ;;  %vm2120_vm5 = vcmask 458112   ;;  %vm2127_vm6 = vcmask 523712  }
  0x86   : > { %1762 = vmatprep.subr.bf16.mxu0 %v2707_v21  ;;  %v310_v52 = vld [vmem:[%s3257_s6] sm:$0xff]  ;;  %v316_v59 = vld [vmem:[%s3257_s6 + $0x30] sm:$0xff]  ;;  %v3279_v60 = vsub.bf16 %v248_v56, %v312_v58  ;;  %vm2134_vm7 = vcmask 589312   ;;  %vm2141_vm8 = vcmask 654912   ;;  %vm2148_vm9 = vcmask 720512   ;;  %s2506_s18 = sshll.u32 %s3080_s16, 4 }
  0x87   : > { %v314_v53 = vld [vmem:[%s3257_s6 + $0x20] sm:$0xff]  ;;  %v3271_v54 = vsub.bf16 %v246_v48, %v310_v52  ;;  %v3283_v62 = vsub.bf16 %v252_v57, %v316_v59  ;;  %v2755_v3 = vld [vmem:[#allocation7 + $0x2d4] ss:$8 sps:$4 sm:$0xff]   ;;  %v2757_v4 = vld [vmem:[#allocation7 + $0xd0] ss:$8 sps:$4 sm:$0xff]   ;;  %vm2155_vm10 = vcmask 786112   ;;  %s3452_s5 = scalar_lea.hbm %s3499_s3, %s2506_s18 }
  0x88   : > { %1537 = vmatpush1.bf16.msra.mxu1 %v2709_v22  ;;  %v3273_v55 = vsub.bf16 %v250_v51, %v314_v53  ;;  %v2758_v5 = vld [vmem:[#allocation7 + $0x2d0] ss:$8 sps:$4 sm:$0xff]   ;;  %v2759_v6 = vld [vmem:[#allocation7 + $0xe4] ss:$8 sps:$4 sm:$0xff]   ;;  %v2763_v8 = vld [vmem:[#allocation7 + $0xe0] ss:$8 sps:$4 sm:$0xff]  }
  0x89   : > { %1763 = vmatpush1.bf16.msra.mxu0 %v2710_v23  ;;  %1538 = vmatprep.subr.bf16.mxu1 %v2711_v24  ;;  %v2319_v2 = vcombine.high %v3279_v60, %v3283_v62  ;;  %v2761_v7 = vld [vmem:[#allocation7 + $0x2e4] ss:$8 sps:$4 sm:$0xff]   ;;  %v2764_v9 = vld [vmem:[#allocation7 + $0x2e0] ss:$8 sps:$4 sm:$0xff]   ;;  %v2765_v10 = vld [vmem:[#allocation7 + $0xf4] ss:$8 sps:$4 sm:$0xff]  }
  0x8a   : > { %1764 = vmatprep.subr.bf16.mxu0 %v2713_v25  ;;  %v2315_v61 = vcombine.high %v3271_v54, %v3273_v55  ;;  %v2767_v11 = vld [vmem:[#allocation7 + $0x2f4] ss:$8 sps:$4 sm:$0xff]   ;;  %v254_v12 = vld [vmem:[%s3250_s26 + $0x40] sm:$0xff]  ;;  %v2769_v20 = vld [vmem:[#allocation7 + $0xf0] ss:$8 sps:$4 sm:$0xff]   ;;  %vm2162_vm11 = vcmask 851712  }
  0x8b   : > { %1784 = vmatprep.mubr.bf16.mxu0 %v2319_v2  ;;  %v258_v13 = vld [vmem:[%s3250_s26 + $0x60] sm:$0xff]  ;;  %v256_v16 = vld [vmem:[%s3250_s26 + $0x50] sm:$0xff]  ;;  %vm2169_vm12 = vcmask 917312   ;;  %vm2176_vm13 = vcmask 982912   ;;  %s243_s7 = scalar_lea.vmem [#allocation8], %s3246_s25  ;;  %vm2183_vm14 = vcmask 1048512  }
  0x8c   : > { %1539 = vmatpush1.bf16.msra.mxu1 %v2715_v26  ;;  %1558 = vmatprep.mubr.bf16.mxu1 %v2315_v61  ;;  %v318_v14 = vld [vmem:[%s3257_s6 + $0x40] sm:$0xff]  ;;  %v260_v17 = vld [vmem:[%s3250_s26 + $0x70] sm:$0xff]  ;;  %s2200_s10 = sshll.u32 %s243_s7, 4  ;;  %s2188_s16 = scalar_lea.sflag [#allocation4], %s3246_s25  ;;  %s3454_s10 = int_to_ptr.vmem [resolvable:$true] %s2200_s10 }
  0x8d   : > { %1765 = vmatpush1.bf16.msra.mxu0 %v2716_v27  ;;  %1540 = vmatprep.subr.bf16.mxu1 %v2717_v28  ;;  %v322_v15 = vld [vmem:[%s3257_s6 + $0x60] sm:$0xff]  ;;  %v320_v18 = vld [vmem:[%s3257_s6 + $0x50] sm:$0xff]  ;;  %v382_v26 = vsub.bf16 %v254_v12, %v318_v14  ;;  %s2955_s8 = scalar_lea.vmem %s3454_s10, 16  ;;  %s3038_s29 = smov [#allocation8]  }
  0x8e   : > { %1766 = vmatprep.subr.bf16.mxu0 %v2719_v29  ;;  %v324_v19 = vld [vmem:[%s3257_s6 + $0x70] sm:$0xff]  ;;  %v2773_v22 = vld [vmem:[#allocation7 + $0x104] ss:$8 sps:$4 sm:$0xff]   ;;  %v2771_v24 = vld [vmem:[#allocation7 + $0x100] ss:$8 sps:$4 sm:$0xff]   ;;  %v386_v27 = vsub.bf16 %v258_v13, %v322_v15  ;;  %v384_v28 = vsub.bf16 %v256_v16, %v320_v18  ;;  %p2956_p3 = scmp.ne.s32.totalorder %s3454_s10, %s2955_s8  ;;  %s2959_s9 = sshll.u32 %s3038_s29, 4  ;;  %s2960_s9 = int_to_ptr.vmem [resolvable:$false] %s2959_s9 }
  0x8f   : > { %v2770_v21 = vld [vmem:[#allocation7 + $0x2f0] ss:$8 sps:$4 sm:$0xff]   ;;  %v2776_v23 = vld [vmem:[#allocation7 + $0x304] ss:$8 sps:$4 sm:$0xff]   ;;  %v2774_v25 = vld [vmem:[#allocation7 + $0x300] ss:$8 sps:$4 sm:$0xff]   ;;  %v388_v29 = vsub.bf16 %v260_v17, %v324_v19  ;;  %p2962_p1 = scmp.lt.s32.totalorder %s3454_s10, %s2960_s9 }
  0x90   : > { %1541 = vmatpush1.bf16.msra.mxu1 %v2721_v30  ;;  %v2314_v30 = vcombine.low %v3271_v54, %v3273_v55  ;;  %v2322_v54 = vcombine.low %v382_v26, %v386_v27  ;;  %v2791_v56 = vld [vmem:[#allocation7 + $0x134] ss:$8 sps:$4 sm:$0xff]   ;;  %v270_v58 = vld [vmem:[%s3250_s26 + $0xc0] sm:$0xff]  ;;  %p2957_p7 = pnand %p2956_p3, %p3150_p12  ;;  %s2961_s11 = scalar_lea.vmem %s2960_s9, 32 }
  0x91   : > { %1767 = vmatpush1.bf16.msra.mxu0 %v2722_v31  ;;  %1542 = vmatprep.subr.bf16.mxu1 %v2723_v32  ;;  %v2318_v31 = vcombine.low %v3279_v60, %v3283_v62  ;;  %v2779_v32 = vld [vmem:[#allocation7 + $0x114] ss:$8 sps:$4 sm:$0xff]   ;;  %v2326_v55 = vcombine.low %v384_v28, %v388_v29  ;;  %v274_v59 = vld [vmem:[%s3250_s26 + $0xe0] sm:$0xff]  ;;  %p2963_p5 = scmp.lt.s32.totalorder %s2961_s11, %s2955_s8 }
  0x92   : > { %1768 = vmatprep.subr.bf16.mxu0 %v2725_v33  ;;  %v2782_v33 = vld [vmem:[#allocation7 + $0x314] ss:$8 sps:$4 sm:$0xff]   ;;  %v334_v62 = vld [vmem:[%s3257_s6 + $0xc0] sm:$0xff]  ;;  %p2958_p9 = pneg %p2957_p7 }
  0x93   : > { %v2794_v57 = vld [vmem:[#allocation7 + $0x334] ss:$8 sps:$4 sm:$0xff]   ;;  %v278_v18 = vld [vmem:[%s3250_s26 + $0x100] sm:$0xff]  ;;  %p2964_p2 = por %p2963_p5, %p2962_p1 }
  0x94   : > { %1543 = vmatpush1.bf16.msra.mxu1 %v2727_v34  ;;  %v262_v34 = vld [vmem:[%s3250_s26 + $0x80] sm:$0xff]  ;;  %v336_v2 = vld [vmem:[%s3257_s6 + $0xd0] sm:$0xff] }
  0x95   : > { %1769 = vmatpush1.bf16.msra.mxu0 %v2728_v35  ;;  %1544 = vmatprep.subr.bf16.mxu1 %v2729_v36  ;;  %v266_v35 = vld [vmem:[%s3250_s26 + $0xa0] sm:$0xff]  ;;  %v2323_v36 = vcombine.high %v382_v26, %v386_v27  ;;  %v2803_v16 = vld [vmem:[#allocation7 + $0x154] ss:$8 sps:$4 sm:$0xff]   ;;  %p2965_p6 = pnand %p2964_p2, %p2958_p9 }
  0x96   : > { %1770 = vmatprep.subr.bf16.mxu0 %v2731_v37  ;;  %v2327_v37 = vcombine.high %v384_v28, %v388_v29  ;;  %v2806_v17 = vld [vmem:[#allocation7 + $0x354] ss:$8 sps:$4 sm:$0xff]   ;;  %v282_v19 = vld [vmem:[%s3250_s26 + $0x120] sm:$0xff]  ;;  %v2801_v28 = vld [vmem:[#allocation7 + $0x150] ss:$8 sps:$4 sm:$0xff]  }
  0x97   : > { %v344_v26 = vld [vmem:[%s3257_s6 + $0x110] sm:$0xff] }
  0x98   : > { %1545 = vmatpush1.bf16.msra.mxu1 %v2733_v38  ;;  %v326_v38 = vld [vmem:[%s3257_s6 + $0x80] sm:$0xff]  ;;  %v348_v27 = vld [vmem:[%s3257_s6 + $0x130] sm:$0xff] }
  0x99   : > { %1771 = vmatpush1.bf16.msra.mxu0 %v2734_v39  ;;  %1546 = vmatprep.subr.bf16.mxu1 %v2735_v40  ;;  %v330_v39 = vld [vmem:[%s3257_s6 + $0xa0] sm:$0xff]  ;;  %v264_v40 = vld [vmem:[%s3250_s26 + $0x90] sm:$0xff]  ;;  %v390_v48 = vsub.bf16 %v262_v34, %v326_v38 }
  0x9a   : > { %1772 = vmatprep.subr.bf16.mxu0 %v2737_v41  ;;  %v268_v41 = vld [vmem:[%s3250_s26 + $0xb0] sm:$0xff]  ;;  %v394_v51 = vsub.bf16 %v266_v35, %v330_v39  ;;  %v2810_v34 = vld [vmem:[#allocation7 + $0x360] ss:$8 sps:$4 sm:$0xff]  }
  0x9b   : > { %v2804_v29 = vld [vmem:[#allocation7 + $0x350] ss:$8 sps:$4 sm:$0xff]  }
  0x9c   : > { %1547 = vmatpush1.bf16.msra.mxu1 %v2739_v42  ;;  %v328_v42 = vld [vmem:[%s3257_s6 + $0x90] sm:$0xff]  ;;  %v2331_v60 = vcombine.high %v390_v48, %v394_v51  ;;  %v2330_v14 = vcombine.low %v390_v48, %v394_v51 }
  0x9d   : > { %1773 = vmatpush1.bf16.msra.mxu0 %v2740_v43  ;;  %1548 = vmatprep.subr.bf16.mxu1 %v2741_v44  ;;  %v332_v43 = vld [vmem:[%s3257_s6 + $0xb0] sm:$0xff]  ;;  %v392_v52 = vsub.bf16 %v264_v40, %v328_v42  ;;  %v286_v42 = vld [vmem:[%s3250_s26 + $0x140] sm:$0xff] }
  0x9e   : > { %1774 = vmatprep.subr.bf16.mxu0 %v2743_v45  ;;  %v2777_v44 = vld [vmem:[#allocation7 + $0x110] ss:$8 sps:$4 sm:$0xff]   ;;  %v396_v53 = vsub.bf16 %v268_v41, %v332_v43  ;;  %v2815_v40 = vld [vmem:[#allocation7 + $0x174] ss:$8 sps:$4 sm:$0xff]   ;;  %v290_v43 = vld [vmem:[%s3250_s26 + $0x160] sm:$0xff] }
  0x9f   : > { %v2780_v45 = vld [vmem:[#allocation7 + $0x310] ss:$8 sps:$4 sm:$0xff]   ;;  %v2818_v41 = vld [vmem:[#allocation7 + $0x374] ss:$8 sps:$4 sm:$0xff]  }
  0xa0   : > { %1549 = vmatpush1.bf16.msra.mxu1 %v2745_v46  ;;  %v2785_v46 = vld [vmem:[#allocation7 + $0x124] ss:$8 sps:$4 sm:$0xff]   ;;  %v2335_v61 = vcombine.high %v392_v52, %v396_v53  ;;  %v2334_v15 = vcombine.low %v392_v52, %v396_v53  ;;  %v288_v48 = vld [vmem:[%s3250_s26 + $0x150] sm:$0xff] }
  0xa1   : > { %1775 = vmatpush1.bf16.msra.mxu0 %v2746_v47  ;;  %1550 = vmatprep.subr.bf16.mxu1 %v2747_v49  ;;  %v2788_v47 = vld [vmem:[#allocation7 + $0x324] ss:$8 sps:$4 sm:$0xff]   ;;  %v2783_v49 = vld [vmem:[#allocation7 + $0x120] ss:$8 sps:$4 sm:$0xff]   ;;  %v356_v51 = vld [vmem:[%s3257_s6 + $0x170] sm:$0xff] }
  0xa2   : > { %1776 = vmatprep.subr.bf16.mxu0 %v2749_v50  ;;  %v2786_v50 = vld [vmem:[#allocation7 + $0x320] ss:$8 sps:$4 sm:$0xff]   ;;  %v2813_v52 = vld [vmem:[#allocation7 + $0x170] ss:$8 sps:$4 sm:$0xff]  }
  0xa3   : > { %v2816_v53 = vld [vmem:[#allocation7 + $0x370] ss:$8 sps:$4 sm:$0xff]  }
  0xa4   : > { %1551 = vmatpush1.bf16.msra.mxu1 %v2751_v63  ;;  %v338_v63 = vld [vmem:[%s3257_s6 + $0xe0] sm:$0xff] }
  0xa5   : > { %1777 = vmatpush1.bf16.msra.mxu0 %v2752_v0  ;;  %1552 = vmatprep.subr.bf16.mxu1 %v2753_v1  ;;  %v272_v0 = vld [vmem:[%s3250_s26 + $0xd0] sm:$0xff] }
  0xa6   : > { %1778 = vmatprep.subr.bf16.mxu0 %v2755_v3  ;;  %v276_v1 = vld [vmem:[%s3250_s26 + $0xf0] sm:$0xff]  ;;  %v400_v12 = vsub.bf16 %v272_v0, %v336_v2  ;;  %v294_v2 = vld [vmem:[%s3250_s26 + $0x180] sm:$0xff] }
  0xa7   : > { %v340_v3 = vld [vmem:[%s3257_s6 + $0xf0] sm:$0xff] }
  0xa8   : > { %1553 = vmatpush1.bf16.msra.mxu1 %v2757_v4  ;;  %v2789_v4 = vld [vmem:[#allocation7 + $0x130] ss:$8 sps:$4 sm:$0xff]   ;;  %v404_v13 = vsub.bf16 %v276_v1, %v340_v3  ;;  %v2827_v0 = vld [vmem:[#allocation7 + $0x194] ss:$8 sps:$4 sm:$0xff]   ;;  %v298_v3 = vld [vmem:[%s3250_s26 + $0x1a0] sm:$0xff] }
  0xa9   : > { %1779 = vmatpush1.bf16.msra.mxu0 %v2758_v5  ;;  %1554 = vmatprep.subr.bf16.mxu1 %v2759_v6  ;;  %v2792_v5 = vld [vmem:[#allocation7 + $0x330] ss:$8 sps:$4 sm:$0xff]   ;;  %v2797_v6 = vld [vmem:[#allocation7 + $0x144] ss:$8 sps:$4 sm:$0xff]   ;;  %v2830_v1 = vld [vmem:[#allocation7 + $0x394] ss:$8 sps:$4 sm:$0xff]  }
  0xaa   : > { %1780 = vmatprep.subr.bf16.mxu0 %v2761_v7  ;;  %v2800_v7 = vld [vmem:[#allocation7 + $0x344] ss:$8 sps:$4 sm:$0xff]   ;;  %v2342_v39 = vcombine.low %v400_v12, %v404_v13 }
  0xac   : > { %1555 = vmatpush1.bf16.msra.mxu1 %v2763_v8  ;;  %v398_v8 = vsub.bf16 %v270_v58, %v334_v62  ;;  %v2822_v58 = vld [vmem:[#allocation7 + $0x380] ss:$8 sps:$4 sm:$0xff]  }
  0xad   : > { %1781 = vmatpush1.bf16.msra.mxu0 %v2764_v9  ;;  %1556 = vmatprep.subr.bf16.mxu1 %v2765_v10  ;;  %v2795_v9 = vld [vmem:[#allocation7 + $0x140] ss:$8 sps:$4 sm:$0xff]  }
  0xae   : > { %1782 = vmatprep.subr.bf16.mxu0 %v2767_v11  ;;  %v2798_v10 = vld [vmem:[#allocation7 + $0x340] ss:$8 sps:$4 sm:$0xff]   ;;  %v402_v11 = vsub.bf16 %v274_v59, %v338_v63 }
  0xb0   : > { %1557 = vmatpush1.bf16.msra.mxu1 %v2769_v20  ;;  %v2339_v20 = vcombine.high %v398_v8, %v402_v11  ;;  %v2338_v38 = vcombine.low %v398_v8, %v402_v11  ;;  %v296_v8 = vld [vmem:[%s3250_s26 + $0x190] sm:$0xff] }
  0xb1   : > { %1783 = vmatpush1.bf16.msra.mxu0 %v2770_v21  ;;  %1639 = vmatprep.subr.bf16.mxu1 %v2773_v22  ;;  %v2343_v21 = vcombine.high %v400_v12, %v404_v13  ;;  %v342_v22 = vld [vmem:[%s3257_s6 + $0x100] sm:$0xff]  ;;  %v364_v11 = vld [vmem:[%s3257_s6 + $0x1b0] sm:$0xff] }
  0xb2   : > { %1865 = vmatprep.subr.bf16.mxu0 %v2776_v23  ;;  %v346_v23 = vld [vmem:[%s3257_s6 + $0x120] sm:$0xff]  ;;  %v2825_v12 = vld [vmem:[#allocation7 + $0x190] ss:$8 sps:$4 sm:$0xff]  }
  0xb3   : > { %1559 = vmatmul.mubr.bf16.vlgmr.msra.gmra.mrb[0].mxu1 %v2314_v30  ;;  %v2809_v30 = vld [vmem:[#allocation7 + $0x164] ss:$8 sps:$4 sm:$0xff]   ;;  %v410_v35 = vsub.bf16 %v282_v19, %v346_v23  ;;  %v2828_v13 = vld [vmem:[#allocation7 + $0x390] ss:$8 sps:$4 sm:$0xff]  }
  0xb4   : > { %1785 = vmatmul.mubr.bf16.vlgmr.msra.gmra.mrb[0].mxu0 %v2318_v31  ;;  %1640 = vmatpush1.bf16.msra.mxu1 %v2771_v24  ;;  %v280_v24 = vld [vmem:[%s3250_s26 + $0x110] sm:$0xff]  ;;  %v2812_v31 = vld [vmem:[#allocation7 + $0x364] ss:$8 sps:$4 sm:$0xff]  }
  0xb5   : > { %1866 = vmatpush1.bf16.msra.mxu0 %v2774_v25  ;;  %1641 = vmatprep.subr.bf16.mxu1 %v2779_v32  ;;  %v284_v25 = vld [vmem:[%s3250_s26 + $0x130] sm:$0xff]  ;;  %v406_v32 = vsub.bf16 %v278_v18, %v342_v22  ;;  %v2834_v18 = vld [vmem:[#allocation7 + $0x3a0] ss:$8 sps:$4 sm:$0xff]  }
  0xb6   : > { %1867 = vmatprep.subr.bf16.mxu0 %v2782_v33  ;;  %1568 = vmatprep.mubr.bf16.mxu1 %v2323_v36  ;;  %v2807_v33 = vld [vmem:[#allocation7 + $0x160] ss:$8 sps:$4 sm:$0xff]   ;;  %v408_v36 = vsub.bf16 %v280_v24, %v344_v26  ;;  %v2839_v24 = vld [vmem:[#allocation7 + $0x1b4] ss:$8 sps:$4 sm:$0xff]  }
  0xb7   : > { %1794 = vmatprep.mubr.bf16.mxu0 %v2327_v37  ;;  %v412_v37 = vsub.bf16 %v284_v25, %v348_v27  ;;  %v2346_v62 = vcombine.low %v406_v32, %v410_v35  ;;  %v2842_v25 = vld [vmem:[#allocation7 + $0x3b4] ss:$8 sps:$4 sm:$0xff]   ;;  %v302_v26 = vld [vmem:[%s3250_s26 + $0x1c0] sm:$0xff] }
  0xb8   : > { %1642 = vmatpush1.bf16.msra.mxu1 %v2777_v44  ;;  %v2347_v44 = vcombine.high %v406_v32, %v410_v35  ;;  %v306_v27 = vld [vmem:[%s3250_s26 + $0x1e0] sm:$0xff]  ;;  %v304_v32 = vld [vmem:[%s3250_s26 + $0x1d0] sm:$0xff] }
  0xb9   : > { %1868 = vmatpush1.bf16.msra.mxu0 %v2780_v45  ;;  %1643 = vmatprep.subr.bf16.mxu1 %v2785_v46  ;;  %v2351_v45 = vcombine.high %v408_v36, %v412_v37  ;;  %v350_v46 = vld [vmem:[%s3257_s6 + $0x140] sm:$0xff]  ;;  %v2350_v63 = vcombine.low %v408_v36, %v412_v37  ;;  %v372_v35 = vld [vmem:[%s3257_s6 + $0x1f0] sm:$0xff] }
  0xba   : > { %1869 = vmatprep.subr.bf16.mxu0 %v2788_v47  ;;  %v354_v47 = vld [vmem:[%s3257_s6 + $0x160] sm:$0xff]  ;;  %v2837_v36 = vld [vmem:[#allocation7 + $0x1b0] ss:$8 sps:$4 sm:$0xff]  }
  0xbb   : > { %1569 = vmatmul.mubr.bf16.gmra.mrb[4].mxu1 %v2322_v54  ;;  %v2821_v54 = vld [vmem:[#allocation7 + $0x184] ss:$8 sps:$4 sm:$0xff]   ;;  %v418_v59 = vsub.bf16 %v290_v43, %v354_v47  ;;  %v2840_v37 = vld [vmem:[#allocation7 + $0x3b0] ss:$8 sps:$4 sm:$0xff]   ;;  %v2846_v47 = vld [vmem:[#allocation7 + $0x3c0] ss:$8 sps:$4 sm:$0xff]  }
  0xbc   : > { %1795 = vmatmul.mubr.bf16.gmra.mrb[4].mxu0 %v2326_v55  ;;  %1644 = vmatpush1.bf16.msra.mxu1 %v2783_v49  ;;  %v292_v49 = vld [vmem:[%s3250_s26 + $0x170] sm:$0xff]  ;;  %v2824_v55 = vld [vmem:[#allocation7 + $0x384] ss:$8 sps:$4 sm:$0xff]  }
  0xbd   : > { %1870 = vmatpush1.bf16.msra.mxu0 %v2786_v50  ;;  %1645 = vmatprep.subr.bf16.mxu1 %v2791_v56  ;;  %v352_v50 = vld [vmem:[%s3257_s6 + $0x150] sm:$0xff]  ;;  %v414_v56 = vsub.bf16 %v286_v42, %v350_v46  ;;  %v2843_v46 = vld [vmem:[#allocation7 + $0x1c0] ss:$8 sps:$4 sm:$0xff]  }
  0xbe   : > { %1871 = vmatprep.subr.bf16.mxu0 %v2794_v57  ;;  %1578 = vmatprep.mubr.bf16.mxu1 %v2331_v60  ;;  %v2819_v57 = vld [vmem:[#allocation7 + $0x180] ss:$8 sps:$4 sm:$0xff]   ;;  %v416_v60 = vsub.bf16 %v288_v48, %v352_v50  ;;  %v2851_v48 = vld [vmem:[#allocation7 + $0x1d4] ss:$8 sps:$4 sm:$0xff]  }
  0xbf   : > { %1804 = vmatprep.mubr.bf16.mxu0 %v2335_v61  ;;  %v420_v61 = vsub.bf16 %v292_v49, %v356_v51  ;;  %v2354_v22 = vcombine.low %v414_v56, %v418_v59  ;;  %v2854_v49 = vld [vmem:[#allocation7 + $0x3d4] ss:$8 sps:$4 sm:$0xff]   ;;  %v247_v50 = vld [vmem:[%s3250_s26 + $0x8] sm:$0xff] }
  0xc0   : > { %1646 = vmatpush1.bf16.msra.mxu1 %v2789_v4  ;;  %v2355_v4 = vcombine.high %v414_v56, %v418_v59  ;;  %v251_v51 = vld [vmem:[%s3250_s26 + $0x28] sm:$0xff]  ;;  %v249_v56 = vld [vmem:[%s3250_s26 + $0x18] sm:$0xff] }
  0xc1   : > { %1872 = vmatpush1.bf16.msra.mxu0 %v2792_v5  ;;  %1647 = vmatprep.subr.bf16.mxu1 %v2797_v6  ;;  %v2359_v5 = vcombine.high %v416_v60, %v420_v61  ;;  %v358_v6 = vld [vmem:[%s3257_s6 + $0x180] sm:$0xff]  ;;  %v2358_v23 = vcombine.low %v416_v60, %v420_v61  ;;  %v317_v59 = vld [vmem:[%s3257_s6 + $0x38] sm:$0xff] }
  0xc2   : > { %1873 = vmatprep.subr.bf16.mxu0 %v2800_v7  ;;  %v362_v7 = vld [vmem:[%s3257_s6 + $0x1a0] sm:$0xff]  ;;  %v2849_v60 = vld [vmem:[#allocation7 + $0x1d0] ss:$8 sps:$4 sm:$0xff]  }
  0xc3   : > { %1579 = vmatmul.mubr.bf16.gmra.mrb[8].mxu1 %v2330_v14  ;;  %v2833_v14 = vld [vmem:[#allocation7 + $0x1a4] ss:$8 sps:$4 sm:$0xff]   ;;  %v426_v19 = vsub.bf16 %v298_v3, %v362_v7  ;;  %v2852_v61 = vld [vmem:[#allocation7 + $0x3d0] ss:$8 sps:$4 sm:$0xff]  }
  0xc4   : > { %1805 = vmatmul.mubr.bf16.gmra.mrb[8].mxu0 %v2334_v15  ;;  %1648 = vmatpush1.bf16.msra.mxu1 %v2795_v9  ;;  %v300_v9 = vld [vmem:[%s3250_s26 + $0x1b0] sm:$0xff]  ;;  %v2836_v15 = vld [vmem:[#allocation7 + $0x3a4] ss:$8 sps:$4 sm:$0xff]  }
  0xc5   : > { %1874 = vmatpush1.bf16.msra.mxu0 %v2798_v10  ;;  %1649 = vmatprep.subr.bf16.mxu1 %v2803_v16  ;;  %v360_v10 = vld [vmem:[%s3257_s6 + $0x190] sm:$0xff]  ;;  %v422_v16 = vsub.bf16 %v294_v2, %v358_v6  ;;  %v2858_v2 = vld [vmem:[#allocation7 + $0x3e0] ss:$8 sps:$4 sm:$0xff]  }
  0xc6   : > { %1875 = vmatprep.subr.bf16.mxu0 %v2806_v17  ;;  %1588 = vmatprep.mubr.bf16.mxu1 %v2339_v20  ;;  %v2831_v17 = vld [vmem:[#allocation7 + $0x1a0] ss:$8 sps:$4 sm:$0xff]   ;;  %v424_v20 = vsub.bf16 %v296_v8, %v360_v10  ;;  %v2863_v8 = vld [vmem:[#allocation7 + $0x1f4] ss:$8 sps:$4 sm:$0xff]  }
  0xc7   : > { %1814 = vmatprep.mubr.bf16.mxu0 %v2343_v21  ;;  %v428_v21 = vsub.bf16 %v300_v9, %v364_v11  ;;  %v2866_v9 = vld [vmem:[#allocation7 + $0x3f4] ss:$8 sps:$4 sm:$0xff]   ;;  %v255_v10 = vld [vmem:[%s3250_s26 + $0x48] sm:$0xff] }
  0xc8   : > { %1650 = vmatpush1.bf16.msra.mxu1 %v2801_v28  ;;  %v2363_v28 = vcombine.high %v422_v16, %v426_v19  ;;  %v259_v11 = vld [vmem:[%s3250_s26 + $0x68] sm:$0xff] }
  0xc9   : > { %1876 = vmatpush1.bf16.msra.mxu0 %v2804_v29  ;;  %1651 = vmatprep.subr.bf16.mxu1 %v2809_v30  ;;  %v2367_v29 = vcombine.high %v424_v20, %v428_v21  ;;  %v366_v30 = vld [vmem:[%s3257_s6 + $0x1c0] sm:$0xff] }
  0xca   : > { %1877 = vmatprep.subr.bf16.mxu0 %v2812_v31  ;;  %v370_v31 = vld [vmem:[%s3257_s6 + $0x1e0] sm:$0xff] }
  0xcb   : > { %1589 = vmatmul.mubr.bf16.gmra.mrb[12].mxu1 %v2338_v38  ;;  %v2845_v38 = vld [vmem:[#allocation7 + $0x1c4] ss:$8 sps:$4 sm:$0xff]  }
  0xcc   : > { %1815 = vmatmul.mubr.bf16.gmra.mrb[12].mxu0 %v2342_v39  ;;  %1652 = vmatpush1.bf16.msra.mxu1 %v2807_v33  ;;  %v308_v33 = vld [vmem:[%s3250_s26 + $0x1f0] sm:$0xff]  ;;  %v2848_v39 = vld [vmem:[#allocation7 + $0x3c4] ss:$8 sps:$4 sm:$0xff]  }
  0xcd   : > { %1878 = vmatpush1.bf16.msra.mxu0 %v2810_v34  ;;  %1653 = vmatprep.subr.bf16.mxu1 %v2815_v40  ;;  %v368_v34 = vld [vmem:[%s3257_s6 + $0x1d0] sm:$0xff]  ;;  %v430_v40 = vsub.bf16 %v302_v26, %v366_v30  ;;  %v436_v43 = vsub.bf16 %v308_v33, %v372_v35  ;;  %v331_v33 = vld [vmem:[%s3257_s6 + $0xa8] sm:$0xff]  ;;  %v269_v35 = vld [vmem:[%s3250_s26 + $0xb8] sm:$0xff] }
  0xce   : > { %1879 = vmatprep.subr.bf16.mxu0 %v2818_v41  ;;  %1598 = vmatprep.mubr.bf16.mxu1 %v2347_v44  ;;  %v434_v41 = vsub.bf16 %v306_v27, %v370_v31  ;;  %v432_v42 = vsub.bf16 %v304_v32, %v368_v34  ;;  %v2362_v44 = vcombine.low %v422_v16, %v426_v19  ;;  %v321_v16 = vld [vmem:[%s3257_s6 + $0x58] sm:$0xff]  ;;  %v327_v32 = vld [vmem:[%s3257_s6 + $0x88] sm:$0xff] }
  0xcf   : > { %1824 = vmatprep.mubr.bf16.mxu0 %v2351_v45  ;;  %v2366_v45 = vcombine.low %v424_v20, %v428_v21  ;;  %v2861_v21 = vld [vmem:[#allocation7 + $0x1f0] ss:$8 sps:$4 sm:$0xff]  }
  0xd0   : > { %1654 = vmatpush1.bf16.msra.mxu1 %v2813_v52  ;;  %v2371_v52 = vcombine.high %v430_v40, %v434_v41  ;;  %v2370_v6 = vcombine.low %v430_v40, %v434_v41  ;;  %v2374_v7 = vcombine.low %v432_v42, %v436_v43  ;;  %v265_v34 = vld [vmem:[%s3250_s26 + $0x98] sm:$0xff] }
  0xd1   : > { %1880 = vmatpush1.bf16.msra.mxu0 %v2816_v53  ;;  %1655 = vmatprep.subr.bf16.mxu1 %v2821_v54  ;;  %v2375_v53 = vcombine.high %v432_v42, %v436_v43  ;;  %v311_v54 = vld [vmem:[%s3257_s6 + $0x8] sm:$0xff] }
  0xd2   : > { %1881 = vmatprep.subr.bf16.mxu0 %v2824_v55  ;;  %v315_v55 = vld [vmem:[%s3257_s6 + $0x28] sm:$0xff] }
  0xd3   : > { %1599 = vmatmul.mubr.bf16.gmra.mrb[16].mxu1 %v2346_v62  ;;  %v2857_v62 = vld [vmem:[#allocation7 + $0x1e4] ss:$8 sps:$4 sm:$0xff]   ;;  %v379_v3 = vsub.bf16 %v251_v51, %v315_v55  ;;  %v277_v51 = vld [vmem:[%s3250_s26 + $0xf8] sm:$0xff] }
  0xd4   : > { %1825 = vmatmul.mubr.bf16.gmra.mrb[16].mxu0 %v2350_v63  ;;  %1656 = vmatpush1.bf16.msra.mxu1 %v2819_v57  ;;  %v253_v57 = vld [vmem:[%s3250_s26 + $0x38] sm:$0xff]  ;;  %v2860_v63 = vld [vmem:[#allocation7 + $0x3e4] ss:$8 sps:$4 sm:$0xff]  }
  0xd5   : > { %1882 = vmatpush1.bf16.msra.mxu0 %v2822_v58  ;;  %1657 = vmatprep.subr.bf16.mxu1 %v2827_v0  ;;  %v313_v58 = vld [vmem:[%s3257_s6 + $0x18] sm:$0xff]  ;;  %v375_v0 = vsub.bf16 %v247_v50, %v311_v54 }
  0xd6   : > { %1883 = vmatprep.subr.bf16.mxu0 %v2830_v1  ;;  %1608 = vmatprep.mubr.bf16.mxu1 %v2355_v4  ;;  %v2855_v1 = vld [vmem:[#allocation7 + $0x1e0] ss:$8 sps:$4 sm:$0xff]   ;;  %v377_v4 = vsub.bf16 %v249_v56, %v313_v58  ;;  %v273_v50 = vld [vmem:[%s3250_s26 + $0xd8] sm:$0xff] }
  0xd7   : > { %1834 = vmatprep.mubr.bf16.mxu0 %v2359_v5  ;;  %v381_v5 = vsub.bf16 %v253_v57, %v317_v59  ;;  %v2316_v26 = vcombine.low %v375_v0, %v379_v3 }
  0xd8   : > { %1658 = vmatpush1.bf16.msra.mxu1 %v2825_v12  ;;  %v319_v12 = vld [vmem:[%s3257_s6 + $0x48] sm:$0xff] }
  0xd9   : > { %1884 = vmatpush1.bf16.msra.mxu0 %v2828_v13  ;;  %1659 = vmatprep.subr.bf16.mxu1 %v2833_v14  ;;  %v323_v13 = vld [vmem:[%s3257_s6 + $0x68] sm:$0xff]  ;;  %v257_v14 = vld [vmem:[%s3250_s26 + $0x58] sm:$0xff]  ;;  %v2321_v19 = vcombine.high %v377_v4, %v381_v5  ;;  %v383_v20 = vsub.bf16 %v255_v10, %v319_v12  ;;  %v2320_v27 = vcombine.low %v377_v4, %v381_v5 }
  0xda   : > { %1885 = vmatprep.subr.bf16.mxu0 %v2836_v15  ;;  %v261_v15 = vld [vmem:[%s3250_s26 + $0x78] sm:$0xff]  ;;  %v287_v12 = vld [vmem:[%s3250_s26 + $0x148] sm:$0xff] }
  0xdb   : > { %1609 = vmatmul.mubr.bf16.gmra.mrb[20].mxu1 %v2354_v22  ;;  %v2864_v22 = vld [vmem:[#allocation7 + $0x3f0] ss:$8 sps:$4 sm:$0xff]  }
  0xdc   : > { %1835 = vmatmul.mubr.bf16.gmra.mrb[20].mxu0 %v2358_v23  ;;  %1660 = vmatpush1.bf16.msra.mxu1 %v2831_v17  ;;  %v325_v17 = vld [vmem:[%s3257_s6 + $0x78] sm:$0xff]  ;;  %v387_v23 = vsub.bf16 %v259_v11, %v323_v13  ;;  %v291_v13 = vld [vmem:[%s3250_s26 + $0x168] sm:$0xff] }
  0xdd   : > { %1886 = vmatpush1.bf16.msra.mxu0 %v2834_v18  ;;  %1661 = vmatprep.subr.bf16.mxu1 %v2839_v24  ;;  %v2317_v18 = vcombine.high %v375_v0, %v379_v3  ;;  %v385_v24 = vsub.bf16 %v257_v14, %v321_v16  ;;  %v343_v0 = vld [vmem:[%s3257_s6 + $0x108] sm:$0xff]  ;;  %v285_v3 = vld [vmem:[%s3250_s26 + $0x138] sm:$0xff] }
  0xde   : > { %1887 = vmatprep.subr.bf16.mxu0 %v2842_v25  ;;  %1618 = vmatprep.mubr.bf16.mxu1 %v2363_v28  ;;  %v389_v25 = vsub.bf16 %v261_v15, %v325_v17  ;;  %v263_v28 = vld [vmem:[%s3250_s26 + $0x88] sm:$0xff]  ;;  %v2325_v30 = vcombine.high %v383_v20, %v387_v23  ;;  %v2324_v42 = vcombine.low %v383_v20, %v387_v23  ;;  %v345_v4 = vld [vmem:[%s3257_s6 + $0x118] sm:$0xff] }
  0xdf   : > { %1844 = vmatprep.mubr.bf16.mxu0 %v2367_v29  ;;  %v267_v29 = vld [vmem:[%s3250_s26 + $0xa8] sm:$0xff]  ;;  %v349_v5 = vld [vmem:[%s3257_s6 + $0x138] sm:$0xff] }
  0xe0   : > { %1662 = vmatpush1.bf16.msra.mxu1 %v2837_v36  ;;  %v2329_v31 = vcombine.high %v385_v24, %v389_v25  ;;  %v329_v36 = vld [vmem:[%s3257_s6 + $0x98] sm:$0xff]  ;;  %v2328_v43 = vcombine.low %v385_v24, %v389_v25  ;;  %v351_v16 = vld [vmem:[%s3257_s6 + $0x148] sm:$0xff] }
  0xe1   : > { %1888 = vmatpush1.bf16.msra.mxu0 %v2840_v37  ;;  %1663 = vmatprep.subr.bf16.mxu1 %v2845_v38  ;;  %v333_v37 = vld [vmem:[%s3257_s6 + $0xb8] sm:$0xff]  ;;  %v391_v38 = vsub.bf16 %v263_v28, %v327_v32  ;;  %v393_v40 = vsub.bf16 %v265_v34, %v329_v36  ;;  %v355_v17 = vld [vmem:[%s3257_s6 + $0x168] sm:$0xff] }
  0xe2   : > { %1889 = vmatprep.subr.bf16.mxu0 %v2848_v39  ;;  %v395_v39 = vsub.bf16 %v267_v29, %v331_v33  ;;  %v397_v41 = vsub.bf16 %v269_v35, %v333_v37  ;;  %v353_v20 = vld [vmem:[%s3257_s6 + $0x158] sm:$0xff]  ;;  %v419_v23 = vsub.bf16 %v291_v13, %v355_v17  ;;  %v295_v28 = vld [vmem:[%s3250_s26 + $0x188] sm:$0xff] }
  0xe3   : > { %1619 = vmatmul.mubr.bf16.gmra.mrb[24].mxu1 %v2362_v44  ;;  %v271_v44 = vld [vmem:[%s3250_s26 + $0xc8] sm:$0xff]  ;;  %v297_v34 = vld [vmem:[%s3250_s26 + $0x198] sm:$0xff] }
  0xe4   : > { %1845 = vmatmul.mubr.bf16.gmra.mrb[24].mxu0 %v2366_v45  ;;  %1664 = vmatpush1.bf16.msra.mxu1 %v2843_v46  ;;  %v275_v45 = vld [vmem:[%s3250_s26 + $0xe8] sm:$0xff]  ;;  %v2333_v46 = vcombine.high %v391_v38, %v395_v39  ;;  %v2332_v58 = vcombine.low %v391_v38, %v395_v39  ;;  %v2336_v59 = vcombine.low %v393_v40, %v397_v41  ;;  %v301_v35 = vld [vmem:[%s3250_s26 + $0x1b8] sm:$0xff] }
  0xe5   : > { %1890 = vmatpush1.bf16.msra.mxu0 %v2846_v47  ;;  %1665 = vmatprep.subr.bf16.mxu1 %v2851_v48  ;;  %v2337_v47 = vcombine.high %v393_v40, %v397_v41  ;;  %v335_v48 = vld [vmem:[%s3257_s6 + $0xc8] sm:$0xff]  ;;  %v361_v36 = vld [vmem:[%s3257_s6 + $0x198] sm:$0xff] }
  0xe6   : > { %1891 = vmatprep.subr.bf16.mxu0 %v2854_v49  ;;  %1628 = vmatprep.mubr.bf16.mxu1 %v2371_v52  ;;  %v339_v49 = vld [vmem:[%s3257_s6 + $0xe8] sm:$0xff]  ;;  %v337_v52 = vld [vmem:[%s3257_s6 + $0xd8] sm:$0xff]  ;;  %v399_v54 = vsub.bf16 %v271_v44, %v335_v48  ;;  %v425_v40 = vsub.bf16 %v297_v34, %v361_v36 }
  0xe7   : > { %1854 = vmatprep.mubr.bf16.mxu0 %v2375_v53  ;;  %v341_v53 = vld [vmem:[%s3257_s6 + $0xf8] sm:$0xff]  ;;  %v403_v55 = vsub.bf16 %v275_v45, %v339_v49  ;;  %v401_v56 = vsub.bf16 %v273_v50, %v337_v52  ;;  %v299_v29 = vld [vmem:[%s3250_s26 + $0x1a8] sm:$0xff] }
  0xe8   : > { %1666 = vmatpush1.bf16.msra.mxu1 %v2849_v60  ;;  %v405_v57 = vsub.bf16 %v277_v51, %v341_v53  ;;  %v279_v60 = vld [vmem:[%s3250_s26 + $0x108] sm:$0xff]  ;;  %v365_v37 = vld [vmem:[%s3257_s6 + $0x1b8] sm:$0xff] }
  0xe9   : > { %1892 = vmatpush1.bf16.msra.mxu0 %v2852_v61  ;;  %1667 = vmatprep.subr.bf16.mxu1 %v2857_v62  ;;  %v283_v61 = vld [vmem:[%s3250_s26 + $0x128] sm:$0xff]  ;;  %v2341_v62 = vcombine.high %v399_v54, %v403_v55  ;;  %v2340_v10 = vcombine.low %v399_v54, %v403_v55  ;;  %v429_v41 = vsub.bf16 %v301_v35, %v365_v37  ;;  %v305_v50 = vld [vmem:[%s3250_s26 + $0x1d8] sm:$0xff] }
  0xea   : > { %1893 = vmatprep.subr.bf16.mxu0 %v2860_v63  ;;  %v2345_v63 = vcombine.high %v401_v56, %v405_v57  ;;  %v2344_v11 = vcombine.low %v401_v56, %v405_v57  ;;  %v359_v32 = vld [vmem:[%s3257_s6 + $0x188] sm:$0xff]  ;;  %v309_v51 = vld [vmem:[%s3250_s26 + $0x1f8] sm:$0xff] }
  0xeb   : > { %1629 = vmatmul.mubr.bf16.gmra.mrb[28].mxu1 %v2370_v6  ;;  %v407_v6 = vsub.bf16 %v279_v60, %v343_v0  ;;  %v363_v33 = vld [vmem:[%s3257_s6 + $0x1a8] sm:$0xff]  ;;  %v423_v38 = vsub.bf16 %v295_v28, %v359_v32  ;;  %v369_v52 = vld [vmem:[%s3257_s6 + $0x1d8] sm:$0xff] }
  0xec   : > { %1855 = vmatmul.mubr.bf16.gmra.mrb[28].mxu0 %v2374_v7  ;;  %1668 = vmatpush1.bf16.msra.mxu1 %v2855_v1  ;;  %v347_v1 = vld [vmem:[%s3257_s6 + $0x128] sm:$0xff]  ;;  %v427_v39 = vsub.bf16 %v299_v29, %v363_v33  ;;  %v373_v53 = vld [vmem:[%s3257_s6 + $0x1f8] sm:$0xff]  ;;  %v433_v56 = vsub.bf16 %v305_v50, %v369_v52 }
  0xed   : > { %1894 = vmatpush1.bf16.msra.mxu0 %v2858_v2  ;;  %1669 = vmatprep.subr.bf16.mxu1 %v2863_v8  ;;  %v281_v2 = vld [vmem:[%s3250_s26 + $0x118] sm:$0xff]  ;;  %v411_v7 = vsub.bf16 %v283_v61, %v347_v1  ;;  %v303_v44 = vld [vmem:[%s3250_s26 + $0x1c8] sm:$0xff]  ;;  %v437_v57 = vsub.bf16 %v309_v51, %v373_v53 }
  0xee   : > { %1895 = vmatprep.subr.bf16.mxu0 %v2866_v9  ;;  %1671 = vmatprep.mubr.bf16.mxu1 %v2317_v18  ;;  %v409_v8 = vsub.bf16 %v281_v2, %v345_v4  ;;  %v413_v9 = vsub.bf16 %v285_v3, %v349_v5  ;;  %v289_v18 = vld [vmem:[%s3250_s26 + $0x158] sm:$0xff]  ;;  %v307_v45 = vld [vmem:[%s3250_s26 + $0x1e8] sm:$0xff] }
  0xef   : > { %1897 = vmatprep.mubr.bf16.mxu0 %v2321_v19  ;;  %v2349_v14 = vcombine.high %v407_v6, %v411_v7  ;;  %v293_v19 = vld [vmem:[%s3250_s26 + $0x178] sm:$0xff]  ;;  %v417_v24 = vsub.bf16 %v289_v18, %v353_v20  ;;  %v367_v48 = vld [vmem:[%s3257_s6 + $0x1c8] sm:$0xff]  ;;  %v2377_v61 = vcombine.high %v433_v56, %v437_v57 }
  0xf0   : > { %1670 = vmatpush1.bf16.msra.mxu1 %v2861_v21  ;;  %v2353_v15 = vcombine.high %v409_v8, %v413_v9  ;;  %v357_v21 = vld [vmem:[%s3257_s6 + $0x178] sm:$0xff]  ;;  %v371_v49 = vld [vmem:[%s3257_s6 + $0x1e8] sm:$0xff]  ;;  %v431_v54 = vsub.bf16 %v303_v44, %v367_v48 }
  0xf1   : > { %1896 = vmatpush1.bf16.msra.mxu0 %v2864_v22  ;;  %v415_v22 = vsub.bf16 %v287_v12, %v351_v16  ;;  %v421_v25 = vsub.bf16 %v293_v19, %v357_v21  ;;  %v435_v55 = vsub.bf16 %v307_v45, %v371_v49 }
  0xf3   : > { %1672 = vmatmul.mubr.bf16.vlgmr.msra.gmra.mrb[0].mxu1 %v2316_v26  ;;  %v2348_v26 = vcombine.low %v407_v6, %v411_v7  ;;  %v2373_v60 = vcombine.high %v431_v54, %v435_v55 }
  0xf4   : > { %1898 = vmatmul.mubr.bf16.vlgmr.msra.gmra.mrb[0].mxu0 %v2320_v27  ;;  %1681 = vmatprep.mubr.bf16.mxu1 %v2325_v30  ;;  %v2352_v27 = vcombine.low %v409_v8, %v413_v9  ;;  %v2357_v30 = vcombine.high %v415_v22, %v419_v23 }
  0xf5   : > { %1907 = vmatprep.mubr.bf16.mxu0 %v2329_v31  ;;  %v2361_v31 = vcombine.high %v417_v24, %v421_v25 }
  0xfb   : > { %1682 = vmatmul.mubr.bf16.gmra.mrb[4].mxu1 %v2324_v42  ;;  %v2356_v42 = vcombine.low %v415_v22, %v419_v23 }
  0xfc   : > { %1908 = vmatmul.mubr.bf16.gmra.mrb[4].mxu0 %v2328_v43  ;;  %1691 = vmatprep.mubr.bf16.mxu1 %v2333_v46  ;;  %v2360_v43 = vcombine.low %v417_v24, %v421_v25  ;;  %v2365_v46 = vcombine.high %v423_v38, %v427_v39 }
  0xfd   : > { %1917 = vmatprep.mubr.bf16.mxu0 %v2337_v47  ;;  %v2369_v47 = vcombine.high %v425_v40, %v429_v41 }
 0x103   : > { %1692 = vmatmul.mubr.bf16.gmra.mrb[8].mxu1 %v2332_v58  ;;  %v2364_v58 = vcombine.low %v423_v38, %v427_v39 }
 0x104   : > { %1918 = vmatmul.mubr.bf16.gmra.mrb[8].mxu0 %v2336_v59  ;;  %1701 = vmatprep.mubr.bf16.mxu1 %v2341_v62  ;;  %v2368_v59 = vcombine.low %v425_v40, %v429_v41  ;;  %v2372_v62 = vcombine.low %v431_v54, %v435_v55 }
 0x105   : > { %1927 = vmatprep.mubr.bf16.mxu0 %v2345_v63  ;;  %v2376_v63 = vcombine.low %v433_v56, %v437_v57 }
 0x10b   : > { %1702 = vmatmul.mubr.bf16.gmra.mrb[12].mxu1 %v2340_v10 }
 0x10c   : > { %1928 = vmatmul.mubr.bf16.gmra.mrb[12].mxu0 %v2344_v11  ;;  %1711 = vmatprep.mubr.bf16.mxu1 %v2349_v14 }
 0x10d   : > { %1937 = vmatprep.mubr.bf16.mxu0 %v2353_v15 }
 0x113   : > { %1712 = vmatmul.mubr.bf16.gmra.mrb[16].mxu1 %v2348_v26 }
 0x114   : > { %1938 = vmatmul.mubr.bf16.gmra.mrb[16].mxu0 %v2352_v27  ;;  %1721 = vmatprep.mubr.bf16.mxu1 %v2357_v30 }
 0x115   : > { %1947 = vmatprep.mubr.bf16.mxu0 %v2361_v31 }
 0x11b   : > { %1722 = vmatmul.mubr.bf16.gmra.mrb[20].mxu1 %v2356_v42 }
 0x11c   : > { %1948 = vmatmul.mubr.bf16.gmra.mrb[20].mxu0 %v2360_v43  ;;  %1731 = vmatprep.mubr.bf16.mxu1 %v2365_v46 }
 0x11d   : > { %1957 = vmatprep.mubr.bf16.mxu0 %v2369_v47 }
 0x123   : > { %1732 = vmatmul.mubr.bf16.gmra.mrb[24].mxu1 %v2364_v58 }
 0x124   : > { %1958 = vmatmul.mubr.bf16.gmra.mrb[24].mxu0 %v2368_v59  ;;  %1741 = vmatprep.mubr.bf16.mxu1 %v2373_v60 }
 0x125   : > { %1967 = vmatprep.mubr.bf16.mxu0 %v2377_v61 }
 0x12b   : > { %1742 = vmatmul.mubr.bf16.gmra.mrb[28].mxu1 %v2372_v62 }
 0x12c   : > { %1968 = vmatmul.mubr.bf16.gmra.mrb[28].mxu0 %v2376_v63 }
 0x1c6   : > { %v1673_v0 = vpop.f32.mrb[0].mxu1 }
 0x1c7   : > { %v1899_v1 = vpop.f32.mrb[0].mxu0  ;;  %v1675_v3 = vpop.f32.mrb[1].mxu1 }
 0x1c8   : > { %v2513_v2 = vadd.f32 %v1899_v1, %v1673_v0  ;;  %v1901_v4 = vpop.f32.mrb[1].mxu0  ;;  %v1677_v6 = vpop.f32.mrb[2].mxu1 }
 0x1c9   : > { %v2514_v5 = vadd.f32 %v1901_v4, %v1675_v3  ;;  %v1903_v7 = vpop.f32.mrb[2].mxu0  ;;  %v1679_v10 = vpop.f32.mrb[3].mxu1 }
 0x1ca   : > { %v1978_v8 = vmul.f32 %v2513_v2, %v2513_v2  ;;  %v2515_v9 = vadd.f32 %v1903_v7, %v1677_v6  ;;  %v1905_v11 = vpop.f32.mrb[3].mxu0 }
 0x1cb   : > { %v1979_v12 = vmul.f32 %v2514_v5, %v2514_v5  ;;  %v2516_v13 = vadd.f32 %v1905_v11, %v1679_v10 }
 0x1cc   : > { %v1980_v14 = vmul.f32 %v2515_v9, %v2515_v9 }
 0x1cd   : > { %v1981_v15 = vmul.f32 %v2516_v13, %v2516_v13  ;;  %v2010_v16 = vadd.f32 %v1979_v12, %v1978_v8 }
 0x1ce   : > { %v1683_v18 = vpop.f32.mrb[4].mxu1 }
 0x1cf   : > { %v1909_v17 = vpop.f32.mrb[4].mxu0  ;;  %2011 = vadd.xlane.f32.xlu0 %v2010_v16  ;;  %v2013_v19 = vadd.f32 %v1981_v15, %v1980_v14  ;;  %v1685_v21 = vpop.f32.mrb[5].mxu1 }
 0x1d0   : > { %v2517_v20 = vadd.f32 %v1909_v17, %v1683_v18  ;;  %v1911_v22 = vpop.f32.mrb[5].mxu0  ;;  %v1687_v24 = vpop.f32.mrb[6].mxu1 }
 0x1d1   : > { %v2518_v23 = vadd.f32 %v1911_v22, %v1685_v21  ;;  %v1913_v25 = vpop.f32.mrb[6].mxu0  ;;  %v1689_v28 = vpop.f32.mrb[7].mxu1 }
 0x1d2   : > { %v1982_v26 = vmul.f32 %v2517_v20, %v2517_v20  ;;  %v2519_v27 = vadd.f32 %v1913_v25, %v1687_v24  ;;  %v1915_v29 = vpop.f32.mrb[7].mxu0 }
 0x1d3   : > { %v1983_v30 = vmul.f32 %v2518_v23, %v2518_v23  ;;  %v2520_v31 = vadd.f32 %v1915_v29, %v1689_v28  ;;  %2014 = vadd.xlane.f32.xlu0 %v2013_v19 }
 0x1d4   : > { %v1984_v32 = vmul.f32 %v2519_v27, %v2519_v27 }
 0x1d5   : > { %v1985_v33 = vmul.f32 %v2520_v31, %v2520_v31  ;;  %v2016_v34 = vadd.f32 %v1983_v30, %v1982_v26 }
 0x1d6   : > { %v1693_v36 = vpop.f32.mrb[8].mxu1 }
 0x1d7   : > { %v1919_v35 = vpop.f32.mrb[8].mxu0  ;;  %2017 = vadd.xlane.f32.xlu1 %v2016_v34  ;;  %v2019_v37 = vadd.f32 %v1985_v33, %v1984_v32  ;;  %v1695_v39 = vpop.f32.mrb[9].mxu1 }
 0x1d8   : > { %v2521_v38 = vadd.f32 %v1919_v35, %v1693_v36  ;;  %v1921_v40 = vpop.f32.mrb[9].mxu0  ;;  %v1697_v42 = vpop.f32.mrb[10].mxu1 }
 0x1d9   : > { %v2522_v41 = vadd.f32 %v1921_v40, %v1695_v39  ;;  %v1923_v43 = vpop.f32.mrb[10].mxu0  ;;  %v1699_v46 = vpop.f32.mrb[11].mxu1 }
 0x1da   : > { %v1986_v44 = vmul.f32 %v2521_v38, %v2521_v38  ;;  %v2523_v45 = vadd.f32 %v1923_v43, %v1697_v42  ;;  %v1925_v47 = vpop.f32.mrb[11].mxu0 }
 0x1db   : > { %v1987_v48 = vmul.f32 %v2522_v41, %v2522_v41  ;;  %v2524_v49 = vadd.f32 %v1925_v47, %v1699_v46  ;;  %2020 = vadd.xlane.f32.xlu1 %v2019_v37 }
 0x1dc   : > { %v1988_v50 = vmul.f32 %v2523_v45, %v2523_v45 }
 0x1dd   : > { %v1989_v51 = vmul.f32 %v2524_v49, %v2524_v49  ;;  %v2022_v52 = vadd.f32 %v1987_v48, %v1986_v44 }
 0x1de   : > { %v1703_v54 = vpop.f32.mrb[12].mxu1 }
 0x1df   : > { %v1929_v53 = vpop.f32.mrb[12].mxu0  ;;  %2023 = vadd.xlane.f32.xlu0 %v2022_v52  ;;  %v2025_v55 = vadd.f32 %v1989_v51, %v1988_v50  ;;  %v1705_v57 = vpop.f32.mrb[13].mxu1 }
 0x1e0   : > { %v2525_v56 = vadd.f32 %v1929_v53, %v1703_v54  ;;  %v1931_v58 = vpop.f32.mrb[13].mxu0  ;;  %v1707_v61 = vpop.f32.mrb[14].mxu1 }
 0x1e1   : > { %v2526_v59 = vadd.f32 %v1931_v58, %v1705_v57  ;;  %v1933_v60 = vpop.f32.mrb[14].mxu0  ;;  %2026 = vadd.xlane.f32.xlu1 %v2025_v55  ;;  %v1709_v0 = vpop.f32.mrb[15].mxu1 }
 0x1e2   : > { %v1990_v62 = vmul.f32 %v2525_v56, %v2525_v56  ;;  %v2527_v63 = vadd.f32 %v1933_v60, %v1707_v61  ;;  %v1935_v1 = vpop.f32.mrb[15].mxu0 }
 0x1e3   : > { %v1991_v2 = vmul.f32 %v2526_v59, %v2526_v59  ;;  %v2528_v3 = vadd.f32 %v1935_v1, %v1709_v0 }
 0x1e4   : > { %v1992_v4 = vmul.f32 %v2527_v63, %v2527_v63 }
 0x1e5   : > { %v1993_v5 = vmul.f32 %v2528_v3, %v2528_v3  ;;  %v2028_v6 = vadd.f32 %v1991_v2, %v1990_v62 }
 0x1e6   : > { %v1713_v8 = vpop.f32.mrb[16].mxu1 }
 0x1e7   : > { %v1939_v7 = vpop.f32.mrb[16].mxu0  ;;  %2029 = vadd.xlane.f32.xlu0 %v2028_v6  ;;  %v2031_v9 = vadd.f32 %v1993_v5, %v1992_v4  ;;  %v1715_v11 = vpop.f32.mrb[17].mxu1 }
 0x1e8   : > { %v2529_v10 = vadd.f32 %v1939_v7, %v1713_v8  ;;  %v1941_v12 = vpop.f32.mrb[17].mxu0  ;;  %v1717_v15 = vpop.f32.mrb[18].mxu1 }
 0x1e9   : > { %v2530_v13 = vadd.f32 %v1941_v12, %v1715_v11  ;;  %v1943_v14 = vpop.f32.mrb[18].mxu0  ;;  %2032 = vadd.xlane.f32.xlu1 %v2031_v9  ;;  %v1719_v18 = vpop.f32.mrb[19].mxu1 }
 0x1ea   : > { %v1994_v16 = vmul.f32 %v2529_v10, %v2529_v10  ;;  %v2531_v17 = vadd.f32 %v1943_v14, %v1717_v15  ;;  %v1945_v19 = vpop.f32.mrb[19].mxu0 }
 0x1eb   : > { %v1995_v20 = vmul.f32 %v2530_v13, %v2530_v13  ;;  %v2532_v21 = vadd.f32 %v1945_v19, %v1719_v18 }
 0x1ec   : > { %v1996_v22 = vmul.f32 %v2531_v17, %v2531_v17 }
 0x1ed   : > { %v1997_v23 = vmul.f32 %v2532_v21, %v2532_v21  ;;  %v2034_v24 = vadd.f32 %v1995_v20, %v1994_v16  ;;  %v2074_v16 = vlaneseq }
 0x1ee   : > { %v1723_v26 = vpop.f32.mrb[20].mxu1 }
 0x1ef   : > { %v1949_v25 = vpop.f32.mrb[20].mxu0  ;;  %2035 = vadd.xlane.f32.xlu0 %v2034_v24  ;;  %v2037_v27 = vadd.f32 %v1997_v23, %v1996_v22  ;;  %v1725_v29 = vpop.f32.mrb[21].mxu1  ;;  %v3411_v17 = vand.u32 127, %v2074_v16  ;;  %v3415_v22 = vshrl.u32 %v2074_v16, 7 }
 0x1f0   : > { %v2533_v28 = vadd.f32 %v1949_v25, %v1723_v26  ;;  %v1951_v30 = vpop.f32.mrb[21].mxu0  ;;  %v1727_v33 = vpop.f32.mrb[22].mxu1 }
 0x1f1   : > { %v2534_v31 = vadd.f32 %v1951_v30, %v1725_v29  ;;  %v1953_v32 = vpop.f32.mrb[22].mxu0  ;;  %2038 = vadd.xlane.f32.xlu1 %v2037_v27  ;;  %v1729_v36 = vpop.f32.mrb[23].mxu1  ;;  %v2080_v19 = vadd.s32 4294967288, %v3411_v17  ;;  %v2087_v20 = vadd.s32 4294967280, %v3411_v17  ;;  %v2094_v23 = vadd.s32 4294967272, %v3411_v17 }
 0x1f2   : > { %v1998_v34 = vmul.f32 %v2533_v28, %v2533_v28  ;;  %v2535_v35 = vadd.f32 %v1953_v32, %v1727_v33  ;;  %v1955_v37 = vpop.f32.mrb[23].mxu0  ;;  %v2101_v24 = vadd.s32 4294967264, %v3411_v17  ;;  %v2078_v28 = vsub.s32 %v3411_v17, %v3415_v22 }
 0x1f3   : > { %v1999_v38 = vmul.f32 %v2534_v31, %v2534_v31  ;;  %v2536_v39 = vadd.f32 %v1955_v37, %v1729_v36  ;;  %v2083_v25 = vsub.s32 %v2080_v19, %v3415_v22  ;;  %v2090_v27 = vsub.s32 %v2087_v20, %v3415_v22 }
 0x1f4   : > { %v2000_v40 = vmul.f32 %v2535_v35, %v2535_v35  ;;  %v2097_v29 = vsub.s32 %v2094_v23, %v3415_v22  ;;  %v2108_v30 = vadd.s32 4294967256, %v3411_v17  ;;  %v2104_v32 = vsub.s32 %v2101_v24, %v3415_v22 }
 0x1f5   : > { %v2001_v41 = vmul.f32 %v2536_v39, %v2536_v39  ;;  %v2040_v42 = vadd.f32 %v1999_v38, %v1998_v34  ;;  %v2115_v33 = vadd.s32 4294967248, %v3411_v17 }
 0x1f6   : > { %v1733_v44 = vpop.f32.mrb[24].mxu1  ;;  %v2111_v39 = vsub.s32 %v2108_v30, %v3415_v22 }
 0x1f7   : > { %v1959_v43 = vpop.f32.mrb[24].mxu0  ;;  %2041 = vadd.xlane.f32.xlu0 %v2040_v42  ;;  %v2043_v45 = vadd.f32 %v2001_v41, %v2000_v40  ;;  %v1735_v47 = vpop.f32.mrb[25].mxu1  ;;  %v2122_v40 = vadd.s32 4294967240, %v3411_v17 }
 0x1f8   : > { %v2537_v46 = vadd.f32 %v1959_v43, %v1733_v44  ;;  %v1961_v48 = vpop.f32.mrb[25].mxu0  ;;  %v1737_v51 = vpop.f32.mrb[26].mxu1  ;;  %v2118_v43 = vsub.s32 %v2115_v33, %v3415_v22  ;;  %v2129_v44 = vadd.s32 4294967232, %v3411_v17 }
 0x1f9   : > { %v2538_v49 = vadd.f32 %v1961_v48, %v1735_v47  ;;  %v1963_v50 = vpop.f32.mrb[26].mxu0  ;;  %2044 = vadd.xlane.f32.xlu1 %v2043_v45  ;;  %v1739_v54 = vpop.f32.mrb[27].mxu1 }
 0x1fa   : > { %v2002_v52 = vmul.f32 %v2537_v46, %v2537_v46  ;;  %v2539_v53 = vadd.f32 %v1963_v50, %v1737_v51  ;;  %v1965_v55 = vpop.f32.mrb[27].mxu0  ;;  %v2125_v50 = vsub.s32 %v2122_v40, %v3415_v22  ;;  %v2136_v51 = vadd.s32 4294967224, %v3411_v17 }
 0x1fb   : > { %v2003_v56 = vmul.f32 %v2538_v49, %v2538_v49  ;;  %v2540_v57 = vadd.f32 %v1965_v55, %v1739_v54  ;;  %v2132_v55 = vsub.s32 %v2129_v44, %v3415_v22 }
 0x1fc   : > { %v2004_v58 = vmul.f32 %v2539_v53, %v2539_v53 }
 0x1fd   : > { %v2005_v59 = vmul.f32 %v2540_v57, %v2540_v57  ;;  %v2046_v60 = vadd.f32 %v2003_v56, %v2002_v52  ;;  %v2143_v56 = vadd.s32 4294967216, %v3411_v17 }
 0x1fe   : > { %v1743_v62 = vpop.f32.mrb[28].mxu1 }
 0x1ff   : > { %v1969_v61 = vpop.f32.mrb[28].mxu0  ;;  %2047 = vadd.xlane.f32.xlu0 %v2046_v60  ;;  %v2049_v63 = vadd.f32 %v2005_v59, %v2004_v58  ;;  %v1745_v1 = vpop.f32.mrb[29].mxu1  ;;  %v2139_v60 = vsub.s32 %v2136_v51, %v3415_v22 }
 0x200   : > { %v2541_v0 = vadd.f32 %v1969_v61, %v1743_v62  ;;  %v1971_v2 = vpop.f32.mrb[29].mxu0  ;;  %v1747_v5 = vpop.f32.mrb[30].mxu1  ;;  %v2150_v61 = vadd.s32 4294967208, %v3411_v17 }
 0x201   : > { %v2542_v3 = vadd.f32 %v1971_v2, %v1745_v1  ;;  %v1973_v4 = vpop.f32.mrb[30].mxu0  ;;  %2050 = vadd.xlane.f32.xlu1 %v2049_v63  ;;  %v1749_v8 = vpop.f32.mrb[31].mxu1  ;;  %v2146_v1 = vsub.s32 %v2143_v56, %v3415_v22  ;;  %v2157_v2 = vadd.s32 4294967200, %v3411_v17 }
 0x202   : > { %v2006_v6 = vmul.f32 %v2541_v0, %v2541_v0  ;;  %v2543_v7 = vadd.f32 %v1973_v4, %v1747_v5  ;;  %v1975_v9 = vpop.f32.mrb[31].mxu0 }
 0x203   : > { %v2007_v10 = vmul.f32 %v2542_v3, %v2542_v3  ;;  %v2544_v11 = vadd.f32 %v1975_v9, %v1749_v8 }
 0x204   : > { %v2008_v12 = vmul.f32 %v2543_v7, %v2543_v7  ;;  %v2164_v7 = vadd.s32 4294967192, %v3411_v17 }
 0x205   : > { %v2009_v13 = vmul.f32 %v2544_v11, %v2544_v11  ;;  %v2052_v14 = vadd.f32 %v2007_v10, %v2006_v6  ;;  %v2153_v6 = vsub.s32 %v2150_v61, %v3415_v22  ;;  %v2160_v11 = vsub.s32 %v2157_v2, %v3415_v22 }
 0x206   : > { %v2167_v16 = vsub.s32 %v2164_v7, %v3415_v22 }
 0x207   : > { %2053 = vadd.xlane.f32.xlu0 %v2052_v14  ;;  %v2055_v15 = vadd.f32 %v2009_v13, %v2008_v12  ;;  %v2171_v13 = vadd.s32 4294967184, %v3411_v17 }
 0x209   : > { %2056 = vadd.xlane.f32.xlu1 %v2055_v15  ;;  %v2174_v23 = vsub.s32 %v2171_v13, %v3415_v22 }
 0x25c   : > { %v2012_v18 = vpop.xlane.xlu0 %2011 }
 0x25d   : > { %v2079_v37 = vrot.slane %v2012_v18, %v2078_v28 }
 0x260   : > { %v2015_v26 = vpop.xlane.xlu0 %2014 }
 0x261   : > { %v2084_v34 = vrot.slane %v2015_v26, %v2083_v25 }
 0x263   : > { %v2086_v45 = vsel %vm2085_vm0, %v2084_v34, %v2079_v37 }
 0x264   : > { %v2018_v21 = vpop.xlane.xlu1 %2017 }
 0x265   : > { %v2091_v36 = vrot.slane %v2018_v21, %v2090_v27  ;;  %v2178_v21 = vadd.s32 4294967176, %v3411_v17 }
 0x267   : > { %v2093_v47 = vsel %vm2092_vm1, %v2091_v36, %v2086_v45  ;;  %v2181_v27 = vsub.s32 %v2178_v21, %v3415_v22 }
 0x268   : > { %v2021_v31 = vpop.xlane.xlu1 %2020 }
 0x269   : > { %v2098_v38 = vrot.slane %v2021_v31, %v2097_v29 }
 0x26b   : > { %v2100_v48 = vsel %vm2099_vm2, %v2098_v38, %v2093_v47 }
 0x26c   : > { %v2024_v35 = vpop.xlane.xlu0 %2023 }
 0x26d   : > { %v2105_v41 = vrot.slane %v2024_v35, %v2104_v32 }
 0x26e   : > { %v2027_v42 = vpop.xlane.xlu1 %2026 }
 0x26f   : > { %v2112_v49 = vrot.slane %v2027_v42, %v2111_v39  ;;  %v2107_v52 = vsel %vm2106_vm3, %v2105_v41, %v2100_v48 }
 0x271   : > { %v2114_v58 = vsel %vm2113_vm4, %v2112_v49, %v2107_v52 }
 0x274   : > { %v2030_v46 = vpop.xlane.xlu0 %2029 }
 0x275   : > { %v2119_v53 = vrot.slane %v2030_v46, %v2118_v43 }
 0x276   : > { %v2033_v54 = vpop.xlane.xlu1 %2032 }
 0x277   : > { %v2126_v59 = vrot.slane %v2033_v54, %v2125_v50  ;;  %v2121_v62 = vsel %vm2120_vm5, %v2119_v53, %v2114_v58 }
 0x279   : > { %v2128_v4 = vsel %vm2127_vm6, %v2126_v59, %v2121_v62 }
 0x27c   : > { %v2036_v57 = vpop.xlane.xlu0 %2035 }
 0x27d   : > { %v2133_v63 = vrot.slane %v2036_v57, %v2132_v55 }
 0x27e   : > { %v2039_v0 = vpop.xlane.xlu1 %2038 }
 0x27f   : > { %v2140_v5 = vrot.slane %v2039_v0, %v2139_v60  ;;  %v2135_v8 = vsel %vm2134_vm7, %v2133_v63, %v2128_v4 }
 0x281   : > { %v2142_v14 = vsel %vm2141_vm8, %v2140_v5, %v2135_v8 }
 0x284   : > { %v2042_v3 = vpop.xlane.xlu0 %2041 }
 0x285   : > { %v2147_v9 = vrot.slane %v2042_v3, %v2146_v1 }
 0x286   : > { %v2045_v10 = vpop.xlane.xlu1 %2044 }
 0x287   : > { %v2154_v15 = vrot.slane %v2045_v10, %v2153_v6  ;;  %v2149_v18 = vsel %vm2148_vm9, %v2147_v9, %v2142_v14 }
 0x289   : > { %v2156_v24 = vsel %vm2155_vm10, %v2154_v15, %v2149_v18 }
 0x28c   : > { %v2048_v12 = vpop.xlane.xlu0 %2047 }
 0x28d   : > { %v2161_v19 = vrot.slane %v2048_v12, %v2160_v11 }
 0x28e   : > { %v2051_v20 = vpop.xlane.xlu1 %2050 }
 0x28f   : > { %v2168_v25 = vrot.slane %v2051_v20, %v2167_v16  ;;  %v2163_v26 = vsel %vm2162_vm11, %v2161_v19, %v2156_v24 }
 0x291   : > { %v2170_v30 = vsel %vm2169_vm12, %v2168_v25, %v2163_v26 }
 0x294   : > { %v2054_v28 = vpop.xlane.xlu0 %2053 }
 0x295   : > { %v2175_v29 = vrot.slane %v2054_v28, %v2174_v23 }
 0x296   : > { %v2057_v17 = vpop.xlane.xlu1 %2056 }
 0x297   : > { %v2177_v31 = vsel %vm2176_vm13, %v2175_v29, %v2170_v30  ;;  %v2182_v32 = vrot.slane %v2057_v17, %v2181_v27 }
 0x299   : > { %v2184_v22 = vsel %vm2183_vm14, %v2182_v32, %v2177_v31 }
 0x29a   : > { %2186 = vst [vmem:[%s243_s7] sm:$0x1] %v2184_v22 }
 0x29b   : > { %2968 = shalt.err (!%p2965_p6)
}
 0x29c   : > { %s2969_s23 = scalar_lea.hbm %s3452_s5, 16  ;;  %s2973_s28 = scalar_lea.hbm %s3499_s3, 32 }
 0x29d   : > { %p2970_p8 = scmp.ne.s32.totalorder %s3452_s5, %s2969_s23  ;;  %p2974_p4 = scmp.lt.u32.totalorder %s3452_s5, %s3499_s3 }
 0x29e   : > { %p2975_p11 = scmp.lt.u32.totalorder %s2973_s28, %s2969_s23  ;;  %p2977_p3 = scmp.lt.u32.totalorder %s2969_s23, %s3452_s5 }
 0x29f   : > { %p2971_p10 = pnand %p2970_p8, %p3150_p12 }
 0x2a0   : > { %p2976_p13 = por %p2975_p11, %p2974_p4 }
 0x2a1   : > { %p2972_p0 = pneg %p2971_p10 }
 0x2a2   : > { %p2978_p7 = por %p2977_p3, %p2976_p13 }
 0x2a4   : > { %p2979_p9 = pnand %p2978_p7, %p2972_p0 }
 0x2a6   : > { %2982 = shalt.err (!%p2979_p9)
}
 0x2a7   : > { %2617 = dma.vmem_to_hbm [thread:$0]  (%p3150_p12), %s3454_s10, 16, %s3452_s5, %s2188_s16  }
 0x2a8 PF: > { %s2212_s20 = sand.u32 1, %s3017_s12   ;;  %p3514_p1 = scmp.ne.s32.totalorder %s3504_s19, 0 }
 0x2a9   : > { %p3515_p5 = scmp.ge.s32.totalorder %s3029_s15, 2  ;;  %s2213_s6 = scalar_lea.sflag [#allocation4], %s2212_s20 }
 0x2ab   : > { %p2631_p2 = pnand %p3515_p5, %p3514_p1 }
 0x2ad   : > { %3012 = dma.done.wait (!%p2631_p2), %s2213_s6, 16  }
 0x2ae   : > { %3014 = vsyncadd (!%p2631_p2), %s2213_s6, 4294967280  ;;  %p19_p6 = scmp.ge.s32.totalorder %s3115_s24, 4   ;;  %s3516_s12 = smov %s3021_s13 }
 0x2af   : > { %s3517_s13 = smov %s3025_s14  ;;  %s3518_s14 = smov %s3146_s17 }
 0x2b0   : > { %s3519_s15 = smov %s3115_s24  ;;  %21 = sbr.rel (!%p19_p6) target bundleno = 7 (0x7), region = 94 }
 0x2b7   :  { %2217 = vsyncpa [#allocation3], 1 }
 0x2b8   :  { %2219 = vsyncpa [#allocation3 + $0x1], 1 }
 0x2b9   :  { %2220 = vsyncpa [#allocation6], 1 }
 0x2ba   :  { %2222 = vsyncpa [#allocation6 + $0x1], 1 }
 0x2bb   :  { %2223 = vsyncpa [#allocation4], 1 }
 0x2bc   :  { %2225 = vsyncpa [#allocation4 + $0x1], 1 }

</bundles_post_ra>
